<compile_context>
chip_gen: v5e
topology: v5e:2x2
jax: 0.10.0
libtpu: 0.0.40
codegen_flags: <defaults>
</compile_context>

<pallas_src>
import jax
import jax.numpy as jnp
from jax import lax
from jax.experimental import pallas as pl
from jax.experimental.pallas import tpu as pltpu

# -- small, module-consistent shapes (embed divisible by n_head=6) --
EMBED = 48
N_HEAD = 6
HEAD = EMBED // N_HEAD
BATCH = 2
SEQ = 8            # Time (<= block_size; causal mask built for actual T)
EPS = 1e-5         # torch nn.LayerNorm default


def _layernorm(x, g, b):
    mu = jnp.mean(x, axis=-1, keepdims=True)
    var = jnp.mean((x - mu) * (x - mu), axis=-1, keepdims=True)
    return (x - mu) * lax.rsqrt(var + EPS) * g + b


def trans_block(x, params, *, n_head=N_HEAD):
    """Pallas forward of the pre-LN transformer block (eval mode)."""
    (ln1g, ln1b, wq, wk, wv, wproj, bproj, ln2g, ln2b, w1, b1, w2, b2) = params
    B, T, C = x.shape
    HD = C // n_head
    BT = B * T
    H4 = 4 * C
    scale = C ** -0.5          # reference scales by Channels(=embed)**-0.5

    # ---- wrapper-side (free) constant prep ----
    # Fused QKV weight, head-major packets: head h owns columns
    # [h*3HD : (h+1)*3HD] = [ Wq_h * scale | Wk_h | Wv_h ].
    wq_s = wq * scale
    packets = []
    for h in range(n_head):
        sl = slice(h * HD, (h + 1) * HD)
        packets += [wq_s[:, sl], wk[:, sl], wv[:, sl]]
    wqkv = jnp.concatenate(packets, axis=1)                        # (C, 3C)

    # Additive block-diagonal causal bias over the folded (B*T) slab:
    # 0 where (same sequence AND col<=row), else -1e30.
    row = jnp.arange(BT)[:, None]
    col = jnp.arange(BT)[None, :]
    allowed = (row // T == col // T) & (col <= row)
    bias = jnp.where(allowed, 0.0, -1e30).astype(jnp.float32)      # (BT, BT)

    x2d = x.reshape(BT, C)                                         # folded (B*T, C) slab

    def kernel(x_ref, bias_ref, ln1g_ref, ln1b_ref, wqkv_ref, wproj_ref, bproj_ref,
               ln2g_ref, ln2b_ref, w1_ref, b1_ref, w2_ref, b2_ref, o_ref):
        xx = x_ref[...].astype(jnp.float32)                        # (BT, C)

        # ---------------- LN1 + fused QKV projection (one 2-D matmul) --------
        xn = _layernorm(xx, ln1g_ref[...], ln1b_ref[...])
        qkv = jnp.dot(xn, wqkv_ref[...],
                      preferred_element_type=jnp.float32)          # (BT, 3C)

        # Head-major view: one 3*HD-wide packet per head -> (NH, BT, 3HD),
        # then cheap minor-dim slices for q / k / v.
        qkv_h = jnp.stack(
            [qkv[:, h * 3 * HD:(h + 1) * 3 * HD] for h in range(n_head)], axis=0)
        q = qkv_h[..., 0:HD]                                       # (NH, BT, HD) (pre-scaled)
        k = qkv_h[..., HD:2 * HD]
        v = qkv_h[..., 2 * HD:3 * HD]

        # ---------------- causal attention, heads batched ---------------------
        s = jnp.einsum('hxd,hyd->hxy', q, k,
                       preferred_element_type=jnp.float32)         # (NH, BT, BT)
        s = s + bias_ref[...]                                      # block-diag causal mask

        m = jnp.max(s, axis=-1, keepdims=True)
        p = jnp.exp(s - m)
        denom = jnp.sum(p, axis=-1, keepdims=True)                 # (NH, BT, 1)
        attn_un = jnp.einsum('hxy,hyd->hxd', p, v,
                             preferred_element_type=jnp.float32)   # (NH, BT, HD)
        # Deferred softmax normalization: scale the (NH,BT,HD) output, not the
        # (NH,BT,BT) probabilities; exact reciprocal keeps the 1e-4 tolerance.
        attn = attn_un * pl.reciprocal(denom, approx=False)

        # Concat heads back onto lanes (lane-dense (BT,C) slab) so the head
        # reduction happens inside one MXU contraction (single matmul / pop).
        attn2d = jnp.concatenate([attn[h] for h in range(n_head)], axis=-1)  # (BT, C)
        proj = jnp.dot(attn2d, wproj_ref[...],
                       preferred_element_type=jnp.float32)
        x1 = xx + proj + bproj_ref[...]                            # residual 1

        # ---------------- LN2 + feed-forward ----------------------------------
        xn2 = _layernorm(x1, ln2g_ref[...], ln2b_ref[...])
        h1 = jnp.dot(xn2, w1_ref[...], preferred_element_type=jnp.float32) + b1_ref[...]
        h1 = jnp.maximum(h1, 0.0)                                  # ReLU
        h2 = jnp.dot(h1, w2_ref[...], preferred_element_type=jnp.float32) + b2_ref[...]

        o_ref[...] = (x1 + h2).astype(o_ref.dtype)                 # residual 2
        # TODO(synk): dropout (p=0.2) is identity here (inference mode).

    full = lambda shape: pl.BlockSpec(shape, lambda i: (0,) * len(shape))
    out2d = pl.pallas_call(
        kernel,
        out_shape=jax.ShapeDtypeStruct((BT, C), x.dtype),
        grid_spec=pltpu.PrefetchScalarGridSpec(
            num_scalar_prefetch=0,
            grid=(1,),                                  # single program; ~115 KB resident
            in_specs=[
                full((BT, C)),                          # x slab
                full((BT, BT)),                         # additive causal bias
                full((1, C)), full((1, C)),             # ln1 gamma/beta
                full((C, 3 * C)),                       # fused head-packet QKV weight
                full((C, C)), full((1, C)),             # Wproj, bproj
                full((1, C)), full((1, C)),             # ln2 gamma/beta
                full((C, H4)), full((1, H4)),           # W1, b1
                full((H4, C)), full((1, C)),            # W2, b2
            ],
            out_specs=full((BT, C)),
        ),
        compiler_params=pltpu.CompilerParams(
            dimension_semantics=("arbitrary",)),
    )(x2d, bias, ln1g, ln1b, wqkv, wproj, bproj, ln2g, ln2b, w1, b1, w2, b2)
    return out2d.reshape(B, T, C)


def make_params(key, C, n_head):
    H4 = 4 * C
    ks = jax.random.split(key, 8)
    s = 0.02
    ln1g = jnp.ones((1, C), jnp.float32)
    ln1b = jnp.zeros((1, C), jnp.float32)
    ln2g = jnp.ones((1, C), jnp.float32)
    ln2b = jnp.zeros((1, C), jnp.float32)
    wq = s * jax.random.normal(ks[0], (C, C), jnp.float32)
    wk = s * jax.random.normal(ks[1], (C, C), jnp.float32)
    wv = s * jax.random.normal(ks[2], (C, C), jnp.float32)
    wproj = s * jax.random.normal(ks[3], (C, C), jnp.float32)
    bproj = s * jax.random.normal(ks[4], (1, C), jnp.float32)
    w1 = s * jax.random.normal(ks[5], (C, H4), jnp.float32)
    b1 = s * jax.random.normal(ks[6], (1, H4), jnp.float32)
    w2 = s * jax.random.normal(ks[7], (H4, C), jnp.float32)
    b2 = jnp.zeros((1, C), jnp.float32)
    return (ln1g, ln1b, wq, wk, wv, wproj, bproj, ln2g, ln2b, w1, b1, w2, b2)


def trans_block_ref(x, params):
    """Pure-JAX reference mirroring the PyTorch forward (eval mode)."""
    (ln1g, ln1b, wq, wk, wv, wproj, bproj, ln2g, ln2b, w1, b1, w2, b2) = params
    B, T, C = x.shape
    xn = _layernorm(x, ln1g, ln1b)
    q = xn @ wq; k = xn @ wk; v = xn @ wv
    scale = C ** -0.5
    causal = jnp.tril(jnp.ones((T, T), bool))
    outs = []
    for h in range(N_HEAD):
        qs, ks_, vs = (a[..., h * HEAD:(h + 1) * HEAD] for a in (q, k, v))
        wei = jnp.einsum("btd,bsd->bts", qs, ks_) * scale
        wei = jnp.where(causal, wei, -jnp.inf)
        wei = jax.nn.softmax(wei, axis=-1)
        outs.append(jnp.einsum("bts,bsd->btd", wei, vs))
    attn = jnp.concatenate(outs, axis=-1)
    x1 = x + attn @ wproj + bproj
    xn2 = _layernorm(x1, ln2g, ln2b)
    return x1 + jnp.maximum(xn2 @ w1 + b1, 0.0) @ w2 + b2


if __name__ == "__main__":
    key = jax.random.PRNGKey(0)
    kx, kp = jax.random.split(key)
    x = jax.random.normal(kx, (BATCH, SEQ, EMBED), jnp.float32)
    params = make_params(kp, EMBED, N_HEAD)

    out = jax.block_until_ready(trans_block(x, params))

    ref = trans_block_ref(x, params)
    assert out.shape == (BATCH, SEQ, EMBED)
    assert jnp.allclose(out, ref, atol=1e-4, rtol=1e-4), float(jnp.max(jnp.abs(out - ref)))
    print("KERNEL_OK")
</pallas_src>

<mosaic_0001>
module attributes {stable_mosaic.version = 11 : i64} {
  func.func @kernel(%arg0: i32, %arg1: memref<16x48xf32, #tpu.memory_space<vmem>>, %arg2: memref<16x16xf32, #tpu.memory_space<vmem>>, %arg3: memref<1x48xf32, #tpu.memory_space<vmem>>, %arg4: memref<1x48xf32, #tpu.memory_space<vmem>>, %arg5: memref<48x144xf32, #tpu.memory_space<vmem>>, %arg6: memref<48x48xf32, #tpu.memory_space<vmem>>, %arg7: memref<1x48xf32, #tpu.memory_space<vmem>>, %arg8: memref<1x48xf32, #tpu.memory_space<vmem>>, %arg9: memref<1x48xf32, #tpu.memory_space<vmem>>, %arg10: memref<48x192xf32, #tpu.memory_space<vmem>>, %arg11: memref<1x192xf32, #tpu.memory_space<vmem>>, %arg12: memref<192x48xf32, #tpu.memory_space<vmem>>, %arg13: memref<1x48xf32, #tpu.memory_space<vmem>>, %arg14: memref<16x48xf32, #tpu.memory_space<vmem>>) attributes {dimension_semantics = [#tpu.dimension_semantics<arbitrary>], iteration_bounds = array<i64: 1>, scalar_prefetch = 0 : i64, scratch_operands = 0 : i64, tpu.core_type = #tpu.core_type<tc>, window_params = [{pipeline_mode = #tpu.pipeline_mode<synchronous>, transform_indices = @transform_0, window_bounds = array<i64: 16, 48>}, {pipeline_mode = #tpu.pipeline_mode<synchronous>, transform_indices = @transform_1, window_bounds = array<i64: 16, 16>}, {pipeline_mode = #tpu.pipeline_mode<synchronous>, transform_indices = @transform_2, window_bounds = array<i64: 1, 48>}, {pipeline_mode = #tpu.pipeline_mode<synchronous>, transform_indices = @transform_3, window_bounds = array<i64: 1, 48>}, {pipeline_mode = #tpu.pipeline_mode<synchronous>, transform_indices = @transform_4, window_bounds = array<i64: 48, 144>}, {pipeline_mode = #tpu.pipeline_mode<synchronous>, transform_indices = @transform_5, window_bounds = array<i64: 48, 48>}, {pipeline_mode = #tpu.pipeline_mode<synchronous>, transform_indices = @transform_6, window_bounds = array<i64: 1, 48>}, {pipeline_mode = #tpu.pipeline_mode<synchronous>, transform_indices = @transform_7, window_bounds = array<i64: 1, 48>}, {pipeline_mode = #tpu.pipeline_mode<synchronous>, transform_indices = @transform_8, window_bounds = array<i64: 1, 48>}, {pipeline_mode = #tpu.pipeline_mode<synchronous>, transform_indices = @transform_9, window_bounds = array<i64: 48, 192>}, {pipeline_mode = #tpu.pipeline_mode<synchronous>, transform_indices = @transform_10, window_bounds = array<i64: 1, 192>}, {pipeline_mode = #tpu.pipeline_mode<synchronous>, transform_indices = @transform_11, window_bounds = array<i64: 192, 48>}, {pipeline_mode = #tpu.pipeline_mode<synchronous>, transform_indices = @transform_12, window_bounds = array<i64: 1, 48>}, {pipeline_mode = #tpu.pipeline_mode<synchronous>, transform_indices = @transform_13, window_bounds = array<i64: 16, 48>}]} {
    %c0 = arith.constant 0 : index
    %c0_0 = arith.constant 0 : index
    %0 = vector.load %arg1[%c0, %c0_0] : memref<16x48xf32, #tpu.memory_space<vmem>>, vector<16x48xf32>
    %c0_1 = arith.constant 0 : index
    %c0_2 = arith.constant 0 : index
    %1 = vector.load %arg3[%c0_1, %c0_2] : memref<1x48xf32, #tpu.memory_space<vmem>>, vector<1x48xf32>
    %c0_3 = arith.constant 0 : index
    %c0_4 = arith.constant 0 : index
    %2 = vector.load %arg4[%c0_3, %c0_4] : memref<1x48xf32, #tpu.memory_space<vmem>>, vector<1x48xf32>
    %cst = arith.constant dense<0.000000e+00> : vector<16xf32>
    %3 = vector.multi_reduction <add>, %0, %cst [1] : vector<16x48xf32> to vector<16xf32>
    %4 = vector.shape_cast %3 : vector<16xf32> to vector<16x1xf32>
    %cst_5 = arith.constant 4.800000e+01 : f32
    %5 = vector.broadcast %cst_5 : f32 to vector<16x1xf32>
    %6 = arith.divf %4, %5 : vector<16x1xf32>
    %7 = vector.broadcast %6 : vector<16x1xf32> to vector<16x48xf32>
    %8 = arith.subf %0, %7 : vector<16x48xf32>
    %9 = vector.broadcast %6 : vector<16x1xf32> to vector<16x48xf32>
    %10 = arith.subf %0, %9 : vector<16x48xf32>
    %11 = arith.mulf %8, %10 : vector<16x48xf32>
    %cst_6 = arith.constant dense<0.000000e+00> : vector<16xf32>
    %12 = vector.multi_reduction <add>, %11, %cst_6 [1] : vector<16x48xf32> to vector<16xf32>
    %13 = vector.shape_cast %12 : vector<16xf32> to vector<16x1xf32>
    %cst_7 = arith.constant 4.800000e+01 : f32
    %14 = vector.broadcast %cst_7 : f32 to vector<16x1xf32>
    %15 = arith.divf %13, %14 : vector<16x1xf32>
    %16 = vector.broadcast %6 : vector<16x1xf32> to vector<16x48xf32>
    %17 = arith.subf %0, %16 : vector<16x48xf32>
    %cst_8 = arith.constant 9.99999974E-6 : f32
    %18 = vector.broadcast %cst_8 : f32 to vector<16x1xf32>
    %19 = arith.addf %15, %18 : vector<16x1xf32>
    %20 = math.rsqrt %19 : vector<16x1xf32>
    %21 = vector.broadcast %20 : vector<16x1xf32> to vector<16x48xf32>
    %22 = arith.mulf %17, %21 : vector<16x48xf32>
    %23 = vector.broadcast %1 : vector<1x48xf32> to vector<16x48xf32>
    %24 = arith.mulf %22, %23 : vector<16x48xf32>
    %25 = vector.broadcast %2 : vector<1x48xf32> to vector<16x48xf32>
    %26 = arith.addf %24, %25 : vector<16x48xf32>
    %c0_9 = arith.constant 0 : index
    %c0_10 = arith.constant 0 : index
    %27 = vector.load %arg5[%c0_9, %c0_10] : memref<48x144xf32, #tpu.memory_space<vmem>>, vector<48x144xf32>
    %cst_11 = arith.constant dense<0.000000e+00> : vector<16x144xf32>
    %28 = tpu.matmul %26, %27, %cst_11 {dimension_numbers = #tpu.dot_dimension_numbers<[1], [0], [0], [1], [0, 0, 1, 1], [], []>} : vector<16x48xf32>, vector<48x144xf32>, vector<16x144xf32> -> vector<16x144xf32>
    %29 = vector.extract_strided_slice %28 {offsets = [0, 0], sizes = [16, 24], strides = [1, 1]} : vector<16x144xf32> to vector<16x24xf32>
    %30 = vector.extract_strided_slice %28 {offsets = [0, 24], sizes = [16, 24], strides = [1, 1]} : vector<16x144xf32> to vector<16x24xf32>
    %31 = vector.extract_strided_slice %28 {offsets = [0, 48], sizes = [16, 24], strides = [1, 1]} : vector<16x144xf32> to vector<16x24xf32>
    %32 = vector.extract_strided_slice %28 {offsets = [0, 72], sizes = [16, 24], strides = [1, 1]} : vector<16x144xf32> to vector<16x24xf32>
    %33 = vector.extract_strided_slice %28 {offsets = [0, 96], sizes = [16, 24], strides = [1, 1]} : vector<16x144xf32> to vector<16x24xf32>
    %34 = vector.extract_strided_slice %28 {offsets = [0, 120], sizes = [16, 24], strides = [1, 1]} : vector<16x144xf32> to vector<16x24xf32>
    %35 = vector.shape_cast %29 : vector<16x24xf32> to vector<1x16x24xf32>
    %36 = vector.shape_cast %30 : vector<16x24xf32> to vector<1x16x24xf32>
    %37 = vector.shape_cast %31 : vector<16x24xf32> to vector<1x16x24xf32>
    %38 = vector.shape_cast %32 : vector<16x24xf32> to vector<1x16x24xf32>
    %39 = vector.shape_cast %33 : vector<16x24xf32> to vector<1x16x24xf32>
    %40 = vector.shape_cast %34 : vector<16x24xf32> to vector<1x16x24xf32>
    %41 = tpu.concatenate %35, %36, %37, %38, %39, %40 in 0 : vector<1x16x24xf32>, vector<1x16x24xf32>, vector<1x16x24xf32>, vector<1x16x24xf32>, vector<1x16x24xf32>, vector<1x16x24xf32> -> vector<6x16x24xf32>
    %42 = vector.extract_strided_slice %41 {offsets = [0, 0, 0], sizes = [6, 16, 8], strides = [1, 1, 1]} : vector<6x16x24xf32> to vector<6x16x8xf32>
    %43 = vector.extract_strided_slice %41 {offsets = [0, 0, 8], sizes = [6, 16, 8], strides = [1, 1, 1]} : vector<6x16x24xf32> to vector<6x16x8xf32>
    %44 = vector.extract_strided_slice %41 {offsets = [0, 0, 16], sizes = [6, 16, 8], strides = [1, 1, 1]} : vector<6x16x24xf32> to vector<6x16x8xf32>
    "tpu.trace_start"() <{level = 10 : i32, message = "hxd,hyd->hxy"}> : () -> ()
    %cst_12 = arith.constant dense<0.000000e+00> : vector<6x16x16xf32>
    %45 = tpu.matmul %42, %43, %cst_12 {dimension_numbers = #tpu.dot_dimension_numbers<[2], [2], [1], [1], [0, 0, 0, 1, 1, 1], [0], [0]>} : vector<6x16x8xf32>, vector<6x16x8xf32>, vector<6x16x16xf32> -> vector<6x16x16xf32>
    "tpu.trace_stop"() : () -> ()
    %c0_13 = arith.constant 0 : index
    %c0_14 = arith.constant 0 : index
    %46 = vector.load %arg2[%c0_13, %c0_14] : memref<16x16xf32, #tpu.memory_space<vmem>>, vector<16x16xf32>
    %47 = vector.shape_cast %46 : vector<16x16xf32> to vector<1x16x16xf32>
    %48 = vector.broadcast %47 : vector<1x16x16xf32> to vector<6x16x16xf32>
    %49 = arith.addf %45, %48 : vector<6x16x16xf32>
    %cst_15 = arith.constant dense<0xFF800000> : vector<6x16xf32>
    %50 = vector.multi_reduction <maximumf>, %49, %cst_15 [2] : vector<6x16x16xf32> to vector<6x16xf32>
    %51 = vector.shape_cast %50 : vector<6x16xf32> to vector<6x16x1xf32>
    %52 = vector.broadcast %51 : vector<6x16x1xf32> to vector<6x16x16xf32>
    %53 = arith.subf %49, %52 : vector<6x16x16xf32>
    %54 = math.exp %53 : vector<6x16x16xf32>
    %cst_16 = arith.constant dense<0.000000e+00> : vector<6x16xf32>
    %55 = vector.multi_reduction <add>, %54, %cst_16 [2] : vector<6x16x16xf32> to vector<6x16xf32>
    %56 = vector.shape_cast %55 : vector<6x16xf32> to vector<6x16x1xf32>
    "tpu.trace_start"() <{level = 10 : i32, message = "hxy,hyd->hxd"}> : () -> ()
    %cst_17 = arith.constant dense<0.000000e+00> : vector<6x16x8xf32>
    %57 = tpu.matmul %54, %44, %cst_17 {dimension_numbers = #tpu.dot_dimension_numbers<[2], [1], [1], [2], [0, 0, 0, 1, 1, 2], [0], [0]>} : vector<6x16x16xf32>, vector<6x16x8xf32>, vector<6x16x8xf32> -> vector<6x16x8xf32>
    "tpu.trace_stop"() : () -> ()
    %58 = tpu.reciprocal %56 : vector<6x16x1xf32> -> vector<6x16x1xf32>
    %59 = vector.broadcast %58 : vector<6x16x1xf32> to vector<6x16x8xf32>
    %60 = arith.mulf %57, %59 : vector<6x16x8xf32>
    %61 = vector.extract_strided_slice %60 {offsets = [0, 0, 0], sizes = [1, 16, 8], strides = [1, 1, 1]} : vector<6x16x8xf32> to vector<1x16x8xf32>
    %62 = vector.shape_cast %61 : vector<1x16x8xf32> to vector<16x8xf32>
    %63 = vector.extract_strided_slice %60 {offsets = [1, 0, 0], sizes = [1, 16, 8], strides = [1, 1, 1]} : vector<6x16x8xf32> to vector<1x16x8xf32>
    %64 = vector.shape_cast %63 : vector<1x16x8xf32> to vector<16x8xf32>
    %65 = vector.extract_strided_slice %60 {offsets = [2, 0, 0], sizes = [1, 16, 8], strides = [1, 1, 1]} : vector<6x16x8xf32> to vector<1x16x8xf32>
    %66 = vector.shape_cast %65 : vector<1x16x8xf32> to vector<16x8xf32>
    %67 = vector.extract_strided_slice %60 {offsets = [3, 0, 0], sizes = [1, 16, 8], strides = [1, 1, 1]} : vector<6x16x8xf32> to vector<1x16x8xf32>
    %68 = vector.shape_cast %67 : vector<1x16x8xf32> to vector<16x8xf32>
    %69 = vector.extract_strided_slice %60 {offsets = [4, 0, 0], sizes = [1, 16, 8], strides = [1, 1, 1]} : vector<6x16x8xf32> to vector<1x16x8xf32>
    %70 = vector.shape_cast %69 : vector<1x16x8xf32> to vector<16x8xf32>
    %71 = vector.extract_strided_slice %60 {offsets = [5, 0, 0], sizes = [1, 16, 8], strides = [1, 1, 1]} : vector<6x16x8xf32> to vector<1x16x8xf32>
    %72 = vector.shape_cast %71 : vector<1x16x8xf32> to vector<16x8xf32>
    %73 = tpu.concatenate %62, %64, %66, %68, %70, %72 in 1 : vector<16x8xf32>, vector<16x8xf32>, vector<16x8xf32>, vector<16x8xf32>, vector<16x8xf32>, vector<16x8xf32> -> vector<16x48xf32>
    %c0_18 = arith.constant 0 : index
    %c0_19 = arith.constant 0 : index
    %74 = vector.load %arg6[%c0_18, %c0_19] : memref<48x48xf32, #tpu.memory_space<vmem>>, vector<48x48xf32>
    %cst_20 = arith.constant dense<0.000000e+00> : vector<16x48xf32>
    %75 = tpu.matmul %73, %74, %cst_20 {dimension_numbers = #tpu.dot_dimension_numbers<[1], [0], [0], [1], [0, 0, 1, 1], [], []>} : vector<16x48xf32>, vector<48x48xf32>, vector<16x48xf32> -> vector<16x48xf32>
    %76 = arith.addf %0, %75 : vector<16x48xf32>
    %c0_21 = arith.constant 0 : index
    %c0_22 = arith.constant 0 : index
    %77 = vector.load %arg7[%c0_21, %c0_22] : memref<1x48xf32, #tpu.memory_space<vmem>>, vector<1x48xf32>
    %78 = vector.broadcast %77 : vector<1x48xf32> to vector<16x48xf32>
    %79 = arith.addf %76, %78 : vector<16x48xf32>
    %c0_23 = arith.constant 0 : index
    %c0_24 = arith.constant 0 : index
    %80 = vector.load %arg8[%c0_23, %c0_24] : memref<1x48xf32, #tpu.memory_space<vmem>>, vector<1x48xf32>
    %c0_25 = arith.constant 0 : index
    %c0_26 = arith.constant 0 : index
    %81 = vector.load %arg9[%c0_25, %c0_26] : memref<1x48xf32, #tpu.memory_space<vmem>>, vector<1x48xf32>
    %cst_27 = arith.constant dense<0.000000e+00> : vector<16xf32>
    %82 = vector.multi_reduction <add>, %79, %cst_27 [1] : vector<16x48xf32> to vector<16xf32>
    %83 = vector.shape_cast %82 : vector<16xf32> to vector<16x1xf32>
    %cst_28 = arith.constant 4.800000e+01 : f32
    %84 = vector.broadcast %cst_28 : f32 to vector<16x1xf32>
    %85 = arith.divf %83, %84 : vector<16x1xf32>
    %86 = vector.broadcast %85 : vector<16x1xf32> to vector<16x48xf32>
    %87 = arith.subf %79, %86 : vector<16x48xf32>
    %88 = vector.broadcast %85 : vector<16x1xf32> to vector<16x48xf32>
    %89 = arith.subf %79, %88 : vector<16x48xf32>
    %90 = arith.mulf %87, %89 : vector<16x48xf32>
    %cst_29 = arith.constant dense<0.000000e+00> : vector<16xf32>
    %91 = vector.multi_reduction <add>, %90, %cst_29 [1] : vector<16x48xf32> to vector<16xf32>
    %92 = vector.shape_cast %91 : vector<16xf32> to vector<16x1xf32>
    %cst_30 = arith.constant 4.800000e+01 : f32
    %93 = vector.broadcast %cst_30 : f32 to vector<16x1xf32>
    %94 = arith.divf %92, %93 : vector<16x1xf32>
    %95 = vector.broadcast %85 : vector<16x1xf32> to vector<16x48xf32>
    %96 = arith.subf %79, %95 : vector<16x48xf32>
    %cst_31 = arith.constant 9.99999974E-6 : f32
    %97 = vector.broadcast %cst_31 : f32 to vector<16x1xf32>
    %98 = arith.addf %94, %97 : vector<16x1xf32>
    %99 = math.rsqrt %98 : vector<16x1xf32>
    %100 = vector.broadcast %99 : vector<16x1xf32> to vector<16x48xf32>
    %101 = arith.mulf %96, %100 : vector<16x48xf32>
    %102 = vector.broadcast %80 : vector<1x48xf32> to vector<16x48xf32>
    %103 = arith.mulf %101, %102 : vector<16x48xf32>
    %104 = vector.broadcast %81 : vector<1x48xf32> to vector<16x48xf32>
    %105 = arith.addf %103, %104 : vector<16x48xf32>
    %c0_32 = arith.constant 0 : index
    %c0_33 = arith.constant 0 : index
    %106 = vector.load %arg10[%c0_32, %c0_33] : memref<48x192xf32, #tpu.memory_space<vmem>>, vector<48x192xf32>
    %cst_34 = arith.constant dense<0.000000e+00> : vector<16x192xf32>
    %107 = tpu.matmul %105, %106, %cst_34 {dimension_numbers = #tpu.dot_dimension_numbers<[1], [0], [0], [1], [0, 0, 1, 1], [], []>} : vector<16x48xf32>, vector<48x192xf32>, vector<16x192xf32> -> vector<16x192xf32>
    %c0_35 = arith.constant 0 : index
    %c0_36 = arith.constant 0 : index
    %108 = vector.load %arg11[%c0_35, %c0_36] : memref<1x192xf32, #tpu.memory_space<vmem>>, vector<1x192xf32>
    %109 = vector.broadcast %108 : vector<1x192xf32> to vector<16x192xf32>
    %110 = arith.addf %107, %109 : vector<16x192xf32>
    %cst_37 = arith.constant 0.000000e+00 : f32
    %111 = vector.broadcast %cst_37 : f32 to vector<16x192xf32>
    %112 = arith.maximumf %110, %111 : vector<16x192xf32>
    %c0_38 = arith.constant 0 : index
    %c0_39 = arith.constant 0 : index
    %113 = vector.load %arg12[%c0_38, %c0_39] : memref<192x48xf32, #tpu.memory_space<vmem>>, vector<192x48xf32>
    %cst_40 = arith.constant dense<0.000000e+00> : vector<16x48xf32>
    %114 = tpu.matmul %112, %113, %cst_40 {dimension_numbers = #tpu.dot_dimension_numbers<[1], [0], [0], [1], [0, 0, 1, 1], [], []>} : vector<16x192xf32>, vector<192x48xf32>, vector<16x48xf32> -> vector<16x48xf32>
    %c0_41 = arith.constant 0 : index
    %c0_42 = arith.constant 0 : index
    %115 = vector.load %arg13[%c0_41, %c0_42] : memref<1x48xf32, #tpu.memory_space<vmem>>, vector<1x48xf32>
    %116 = vector.broadcast %115 : vector<1x48xf32> to vector<16x48xf32>
    %117 = arith.addf %114, %116 : vector<16x48xf32>
    %118 = arith.addf %79, %117 : vector<16x48xf32>
    %c0_43 = arith.constant 0 : index
    %c0_44 = arith.constant 0 : index
    %119 = vector.load %arg14[%c0_43, %c0_44] : memref<16x48xf32, #tpu.memory_space<vmem>>, vector<16x48xf32>
    tpu.vector_store %arg14[%c0_43, %c0_44], %118 {strides = array<i32>} : memref<16x48xf32, #tpu.memory_space<vmem>>, vector<16x48xf32>,
    return
  }
  func.func @transform_0(%arg0: i32) -> (i32, i32) {
    %c0_i32 = arith.constant 0 : i32
    %c0_i32_0 = arith.constant 0 : i32
    %c0_i32_1 = arith.constant 0 : i32
    return %c0_i32, %c0_i32_0 : i32, i32
  }
  func.func @transform_1(%arg0: i32) -> (i32, i32) {
    %c0_i32 = arith.constant 0 : i32
    %c0_i32_0 = arith.constant 0 : i32
    %c0_i32_1 = arith.constant 0 : i32
    return %c0_i32, %c0_i32_0 : i32, i32
  }
  func.func @transform_2(%arg0: i32) -> (i32, i32) {
    %c0_i32 = arith.constant 0 : i32
    %c0_i32_0 = arith.constant 0 : i32
    %c0_i32_1 = arith.constant 0 : i32
    return %c0_i32, %c0_i32_0 : i32, i32
  }
  func.func @transform_3(%arg0: i32) -> (i32, i32) {
    %c0_i32 = arith.constant 0 : i32
    %c0_i32_0 = arith.constant 0 : i32
    %c0_i32_1 = arith.constant 0 : i32
    return %c0_i32, %c0_i32_0 : i32, i32
  }
  func.func @transform_4(%arg0: i32) -> (i32, i32) {
    %c0_i32 = arith.constant 0 : i32
    %c0_i32_0 = arith.constant 0 : i32
    %c0_i32_1 = arith.constant 0 : i32
    return %c0_i32, %c0_i32_0 : i32, i32
  }
  func.func @transform_5(%arg0: i32) -> (i32, i32) {
    %c0_i32 = arith.constant 0 : i32
    %c0_i32_0 = arith.constant 0 : i32
    %c0_i32_1 = arith.constant 0 : i32
    return %c0_i32, %c0_i32_0 : i32, i32
  }
  func.func @transform_6(%arg0: i32) -> (i32, i32) {
    %c0_i32 = arith.constant 0 : i32
    %c0_i32_0 = arith.constant 0 : i32
    %c0_i32_1 = arith.constant 0 : i32
    return %c0_i32, %c0_i32_0 : i32, i32
  }
  func.func @transform_7(%arg0: i32) -> (i32, i32) {
    %c0_i32 = arith.constant 0 : i32
    %c0_i32_0 = arith.constant 0 : i32
    %c0_i32_1 = arith.constant 0 : i32
    return %c0_i32, %c0_i32_0 : i32, i32
  }
  func.func @transform_8(%arg0: i32) -> (i32, i32) {
    %c0_i32 = arith.constant 0 : i32
    %c0_i32_0 = arith.constant 0 : i32
    %c0_i32_1 = arith.constant 0 : i32
    return %c0_i32, %c0_i32_0 : i32, i32
  }
  func.func @transform_9(%arg0: i32) -> (i32, i32) {
    %c0_i32 = arith.constant 0 : i32
    %c0_i32_0 = arith.constant 0 : i32
    %c0_i32_1 = arith.constant 0 : i32
    return %c0_i32, %c0_i32_0 : i32, i32
  }
  func.func @transform_10(%arg0: i32) -> (i32, i32) {
    %c0_i32 = arith.constant 0 : i32
    %c0_i32_0 = arith.constant 0 : i32
    %c0_i32_1 = arith.constant 0 : i32
    return %c0_i32, %c0_i32_0 : i32, i32
  }
  func.func @transform_11(%arg0: i32) -> (i32, i32) {
    %c0_i32 = arith.constant 0 : i32
    %c0_i32_0 = arith.constant 0 : i32
    %c0_i32_1 = arith.constant 0 : i32
    return %c0_i32, %c0_i32_0 : i32, i32
  }
  func.func @transform_12(%arg0: i32) -> (i32, i32) {
    %c0_i32 = arith.constant 0 : i32
    %c0_i32_0 = arith.constant 0 : i32
    %c0_i32_1 = arith.constant 0 : i32
    return %c0_i32, %c0_i32_0 : i32, i32
  }
  func.func @transform_13(%arg0: i32) -> (i32, i32) {
    %c0_i32 = arith.constant 0 : i32
    %c0_i32_0 = arith.constant 0 : i32
    %c0_i32_1 = arith.constant 0 : i32
    return %c0_i32, %c0_i32_0 : i32, i32
  }
}

</mosaic_0001>

<bundles_post_ra>
// kernel: tpu_custom_call.1
= control target key start
LH: loop header
LB: loop body
LE: loop exit
PB: predicated region body
PF: predicated region fallthrough
CT: control target
= control target key end

     0   :  { %vm49_vm0 = vcmask 392192   ;;  %s1999_s0 = inlined_call_operand.vmem [shape: f32[16,48], index: 0, kind: input, shape index: {}]   ;;  %s2000_s1 = inlined_call_operand.vmem [shape: f32[16,16], index: 1, kind: input, shape index: {}]   ;;  %s2001_s2 = inlined_call_operand.vmem [shape: f32[1,48], index: 2, kind: input, shape index: {}]   ;;  %s2002_s3 = inlined_call_operand.vmem [shape: f32[1,48], index: 3, kind: input, shape index: {}]   ;;  %s2003_s4 = inlined_call_operand.vmem [shape: f32[48,144], index: 4, kind: input, shape index: {}]   ;;  %s2004_s5 = inlined_call_operand.vmem [shape: f32[48,48], index: 5, kind: input, shape index: {}]   ;;  %s2005_s6 = inlined_call_operand.vmem [shape: f32[1,48], index: 6, kind: input, shape index: {}]   ;;  %s2006_s7 = inlined_call_operand.vmem [shape: f32[1,48], index: 7, kind: input, shape index: {}]   ;;  %s2007_s8 = inlined_call_operand.vmem [shape: f32[1,48], index: 8, kind: input, shape index: {}]   ;;  %s2008_s9 = inlined_call_operand.vmem [shape: f32[48,192], index: 9, kind: input, shape index: {}]   ;;  %s2009_s10 = inlined_call_operand.vmem [shape: f32[1,192], index: 10, kind: input, shape index: {}]   ;;  %s2010_s11 = inlined_call_operand.vmem [shape: f32[192,48], index: 11, kind: input, shape index: {}]   ;;  %s2011_s12 = inlined_call_operand.vmem [shape: f32[1,48], index: 12, kind: input, shape index: {}]   ;;  %s2012_s13 = inlined_call_operand.hbm [shape: f32[16,48], index: 13, kind: output, shape index: {}]  }
   0x1   :  { %v45_v0 = vld [vmem:[%s1999_s0] sm:$0xff] }
   0x2   :  { %v50_v1 = vsel %vm49_vm0, %v45_v0, 0.0 }
   0x3   :  { %51 = vadd.xlane.f32.xlu0 %v50_v1 }
   0x4   :  { %18 = vsyncpa [#allocation3], 0  ;;  %v46_v2 = vld [vmem:[%s1999_s0 + $0x8] sm:$0xff]  ;;  %v1429_v4 = vmov 48.0   ;;  %v121_v21 = vld [vmem:[%s2003_s4 + $0x50] sm:$0xff]  ;;  %s1432_s22 = smov 56  }
   0x5   :  { %v53_v3 = vsel %vm49_vm0, %v46_v2, 0.0  ;;  %1343 = vrcp.f32 %v1429_v4  ;;  %v122_v22 = vld [vmem:[%s2003_s4 + $0x58] sm:$0xff]  ;;  %139 = vmatpush.msra.mxu0 %v121_v21  ;;  %v119_v23 = vld [vmem:[%s2003_s4 + $0x40] sm:$0xff]  ;;  %v120_v24 = vld [vmem:[%s2003_s4 + $0x48] sm:$0xff]  ;;  %s1433_s23 = smov 32   ;;  %s1434_s24 = smov 8  }
   0x6   :  { %162 = vmatpush.msra.mxu1 %v122_v22  ;;  %v117_v25 = vld [vmem:[%s2003_s4 + $0x30] sm:$0xff]  ;;  %v118_v26 = vld [vmem:[%s2003_s4 + $0x38] sm:$0xff]  ;;  %v115_v27 = vld [vmem:[%s2003_s4 + $0x20] sm:$0xff]  ;;  %s1435_s25 = smov 120   ;;  %vm203_vm8 = vcmask 64512   ;;  %s1436_s26 = smov 112  }
   0x7   :  { %140 = vmatpush.msra.mxu0 %v119_v23  ;;  %v116_v28 = vld [vmem:[%s2003_s4 + $0x28] sm:$0xff]  ;;  %v113_v29 = vld [vmem:[%s2003_s4 + $0x10] sm:$0xff]  ;;  %v114_v30 = vld [vmem:[%s2003_s4 + $0x18] sm:$0xff]  ;;  %vm418_vm9 = vcmask 130048   ;;  %s1438_s14 = smov 16   ;;  %s1439_s15 = smov 40  }
   0x8   :  { %163 = vmatpush.msra.mxu1 %v120_v24  ;;  %v111_v31 = vld [vmem:[%s2003_s4] sm:$0xff]  ;;  %v112_v32 = vld [vmem:[%s2003_s4 + $0x8] sm:$0xff]  ;;  %s1234_s17 = sshll.u32 %s2012_s13, 4  ;;  %s1235_s17 = int_to_ptr.hbm [resolvable:$true] %s1234_s17 }
   0x9   :  { %141 = vmatpush.msra.mxu0 %v117_v25  ;;  %v1337_v47 = vld [vmem:[%s2001_s2] ss:$0 sm:$0xff]  ;;  %s1430_s2 = smov 80  }
   0xa   :  { %164 = vmatpush.msra.mxu1 %v118_v26  ;;  %v1338_v51 = vld [vmem:[%s2002_s3] ss:$0 sm:$0xff]  ;;  %s1431_s3 = smov 104  }
   0xb   :  { %54 = vadd.xlane.f32.xlu0 %v53_v3  ;;  %v1344_v5 = vpop.eup %1343  ;;  %142 = vmatpush.msra.mxu0 %v115_v27 }
   0xc   :  { %v57_v6 = vmul.f32 48.0, %v1344_v5  ;;  %vm61_vm1 = vweird.f32 %v1344_v5  ;;  %165 = vmatpush.msra.mxu1 %v116_v28 }
   0xd   :  { %143 = vmatpush.msra.mxu0 %v113_v29 }
   0xe   :  { %v58_v7 = vsub.f32 1.0, %v57_v6  ;;  %166 = vmatpush.msra.mxu1 %v114_v30 }
   0xf   :  { %144 = vmatpush.msra.mxu0 %v111_v31 }
  0x10   :  { %v59_v8 = vmul.f32 %v1344_v5, %v58_v7  ;;  %167 = vmatpush.msra.mxu1 %v112_v32 }
  0x12   :  { %v60_v9 = vadd.f32 %v1344_v5, %v59_v8 }
  0x14   :  { %v1520_v10 = vsel %vm61_vm1, %v1344_v5, %v60_v9 }
  0x76   :  { %v52_v11 = vpop.xlane.xlu0 %51 }
  0x77   :  { %v63_v12 = vmul.f32 %v1520_v10, %v52_v11 }
  0x79   :  { %v65_v13 = vsub.f32 %v45_v0, %v63_v12 }
  0x7b   :  { %v67_v14 = vmul.f32 %v65_v13, %v65_v13 }
  0x7d   :  { %v69_v15 = vsel %vm49_vm0, %v67_v14, 0.0 }
  0x7e   :  { %70 = vadd.xlane.f32.xlu1 %v69_v15  ;;  %v55_v16 = vpop.xlane.xlu0 %54 }
  0x7f   :  { %v64_v17 = vmul.f32 %v1520_v10, %v55_v16 }
  0x81   :  { %v1525_v18 = vsub.f32 %v46_v2, %v64_v17 }
  0x83   :  { %v68_v19 = vmul.f32 %v1525_v18, %v1525_v18 }
  0x85   :  { %v72_v20 = vsel %vm49_vm0, %v68_v19, 0.0 }
  0x86   :  { %73 = vadd.xlane.f32.xlu1 %v72_v20 }
  0xf1   :  { %v71_v33 = vpop.xlane.xlu1 %70 }
  0xf2   :  { %v75_v34 = vmul.f32 %v71_v33, %v1520_v10 }
  0xf4   :  { %v77_v35 = vadd.f32 1e-05, %v75_v34 }
  0xf6   :  { %1345 = vrsqrt.f32 %v77_v35  ;;  %vm85_vm3 = vweird.f32 %v77_v35 }
  0xf9   :  { %v74_v36 = vpop.xlane.xlu1 %73 }
  0xfa   :  { %v76_v37 = vmul.f32 %v74_v36, %v1520_v10 }
  0xfc   :  { %v1346_v38 = vpop.eup %1345  ;;  %v78_v39 = vadd.f32 1e-05, %v76_v37 }
  0xfd   :  { %v80_v40 = vmul.f32 %v1346_v38, %v77_v35  ;;  %vm86_vm2 = vweird.f32 %v1346_v38 }
  0xfe   :  { %1347 = vrsqrt.f32 %v78_v39  ;;  %vm87_vm4 = vmor %vm85_vm3, %vm86_vm2  ;;  %vm95_vm6 = vweird.f32 %v78_v39 }
  0xff   :  { %v81_v41 = vmul.f32 %v1346_v38, %v80_v40 }
 0x101   :  { %v82_v42 = vmul.f32 0.5, %v81_v41 }
 0x103   :  { %v83_v43 = vsub.f32 1.5, %v82_v42 }
 0x104   :  { %v1348_v44 = vpop.eup %1347 }
 0x105   :  { %v84_v45 = vmul.f32 %v1346_v38, %v83_v43  ;;  %v90_v46 = vmul.f32 %v1348_v44, %v78_v39  ;;  %vm96_vm5 = vweird.f32 %v1348_v44 }
 0x106   :  { %vm97_vm7 = vmor %vm95_vm6, %vm96_vm5 }
 0x107   :  { %v88_v48 = vsel %vm87_vm4, %v1346_v38, %v84_v45  ;;  %v91_v49 = vmul.f32 %v1348_v44, %v90_v46 }
 0x108   :  { %v99_v50 = vmul.f32 %v88_v48, %v65_v13  ;;  %v207_v48 = vld [vmem:[%s2000_s1 + $0x8] sm:$0xff] }
 0x109   :  { %v92_v52 = vmul.f32 0.5, %v91_v49 }
 0x10a   :  { %v104_v53 = vmul.f32 %v1337_v47, %v99_v50 }
 0x10b   :  { %v93_v54 = vsub.f32 1.5, %v92_v52 }
 0x10c   :  { %v109_v55 = vadd.f32 %v1338_v51, %v104_v53 }
 0x10d   :  { %v94_v56 = vmul.f32 %v1348_v44, %v93_v54 }
 0x10e   :  { %1246 = vmatmul.msk.f32.vlgmr.msra.gmra.mxu0 %vm49_vm0, %v109_v55  ;;  %1248 = vmatmul.msk.f32.vlgmr.msra.gmra.mxu1 %vm49_vm0, %v109_v55 }
 0x10f   :  { %v98_v57 = vsel %vm97_vm7, %v1348_v44, %v94_v56  ;;  %v206_v44 = vld [vmem:[%s2000_s1] sm:$0xff]  ;;  %s1437_s1 = smov 24  }
 0x110   :  { %v100_v58 = vmul.f32 %v98_v57, %v1525_v18 }
 0x112   :  { %v105_v59 = vmul.f32 %v1337_v47, %v100_v58 }
 0x114   :  { %v110_v60 = vadd.f32 %v1338_v51, %v105_v59 }
 0x116   :  { %1247 = vmatmul.msk.f32.gmra.mxu0 %vm49_vm0, %v110_v60  ;;  %1249 = vmatmul.msk.f32.gmra.mxu1 %vm49_vm0, %v110_v60 }
 0x18b   :  { %v146_v61 = vpop.f32.mrf.mxu0  ;;  %v169_v63 = vpop.f32.mrf.mxu1 }
 0x18c   :  { %181 = vrot.lane.b32.xlu0 %v146_v61, %s1430_s2  ;;  %177 = vrot.lane.b32.xlu2 %v146_v61, %s1431_s3 }
 0x193   :  { %v149_v62 = vpop.f32.mrf.mxu0  ;;  %v172_v0 = vpop.f32.mrf.mxu1 }
 0x194   :  { %185 = vrot.lane.b32.xlu2 %v146_v61, %s1432_s22  ;;  %187 = vrot.lane.b32.xlu1 %v149_v62, %s1432_s22 }
 0x195   :  { %183 = vrot.lane.b32.xlu0 %v149_v62, %s1430_s2 }
 0x19c   :  { %189 = vrot.lane.b32.xlu1 %v146_v61, %s1433_s23  ;;  %179 = vrot.lane.b32.xlu2 %v149_v62, %s1431_s3 }
 0x19d   :  { %195 = vrot.lane.b32.xlu0 %v146_v61, %s1434_s24 }
 0x1a4   :  { %210 = vrot.lane.b32.xlu1 %v149_v62, %s1435_s25  ;;  %191 = vrot.lane.b32.xlu2 %v149_v62, %s1433_s23 }
 0x1a5   :  { %208 = vrot.lane.b32.xlu0 %v146_v61, %s1435_s25 }
 0x1ac   :  { %199 = vrot.lane.b32.xlu2 %v149_v62, %s1434_s24 }
 0x1b4   :  { %201 = vrot.lane.b32.xlu2 %v172_v0, %s1434_s24 }
 0x1bc   :  { %197 = vrot.lane.b32.xlu2 %v169_v63, %s1434_s24 }
 0x1e6   :  { %v178_v1 = vpop.permute.xlu2 %177 }
 0x1e7   :  { %243 = vrot.lane.b32.xlu1 %v178_v1, %s1435_s25  ;;  %v1312_v19 = vpack.i.bf16 %v178_v1, %v146_v61 }
 0x1ee   :  { %v1588_v2 = vpop.permute.xlu2 %185 }
 0x1f6   :  { %v180_v3 = vpop.permute.xlu2 %179 }
 0x1f7   :  { %245 = vrot.lane.b32.xlu2 %v180_v3, %s1435_s25  ;;  %v1307_v20 = vpack.i.bf16 %v180_v3, %v149_v62 }
 0x1fe   :  { %v1591_v4 = vpop.permute.xlu2 %191  ;;  %v1593_v5 = vpop.permute.xlu0 %181 }
 0x1ff   :  { %350 = vrot.lane.b32.xlu1 %v1591_v4, %s1435_s25  ;;  %278 = vrot.lane.b32.xlu2 %v1593_v5, %s1435_s25 }
 0x206   :  { %v1599_v6 = vpop.permute.xlu1 %187  ;;  %v200_v7 = vpop.permute.xlu2 %199 }
 0x207   :  { %v1601_v8 = vpop.permute.xlu0 %183  ;;  %313 = vrot.lane.b32.xlu1 %v1588_v2, %s1435_s25  ;;  %315 = vrot.lane.b32.xlu2 %v1599_v6, %s1435_s25 }
 0x208   :  { %280 = vrot.lane.b32.xlu0 %v1601_v8, %s1435_s25 }
 0x20e   :  { %v190_v9 = vpop.permute.xlu1 %189  ;;  %v202_v11 = vpop.permute.xlu2 %201 }
 0x20f   :  { %v205_v12 = vsel %vm203_vm8, %v200_v7, %v202_v11  ;;  %v196_v13 = vpop.permute.xlu0 %195 }
 0x210   :  { %385 = vrot.lane.b32.xlu0 %v205_v12, %s1435_s25  ;;  %v1322_v14 = vpack.i.bf16 %v205_v12, %v1591_v4 }
 0x212   :  { %1323 = vrot.lane.b32.xlu1 %v1322_v14, %s1436_s26  ;;  %v1332_v14 = vpack.i.bf16 %v1588_v2, %v1593_v5 }
 0x216   :  { %v211_v15 = vpop.permute.xlu1 %210  ;;  %v198_v16 = vpop.permute.xlu2 %197 }
 0x217   :  { %1250 = vmatpush.xpose.msk.msra.mxu2 %vm203_vm8, %v211_v15  ;;  %v204_v17 = vsel %vm203_vm8, %v196_v13, %v198_v16  ;;  %v209_v18 = vpop.permute.xlu0 %208 }
 0x218   :  { %348 = vrot.lane.b32.xlu0 %v190_v9, %s1435_s25  ;;  %383 = vrot.lane.b32.xlu2 %v204_v17, %s1435_s25  ;;  %v1317_v21 = vpack.i.bf16 %v204_v17, %v190_v9 }
 0x21b   :  { %1251 = vmatpush.xpose.msk.msra.mxu2 %vm203_vm8, %v209_v18 }
 0x21e   :  { %1252 = vmatmul.msk.f32.vlgmr.msra.gmra.mxu2 %vm203_vm8, %v146_v61 }
 0x220   :  { %1308 = vrot.lane.b32.xlu0 %v1307_v20, %s1436_s26  ;;  %1313 = vrot.lane.b32.xlu2 %v1312_v19, %s1436_s26 }
 0x226   :  { %1253 = vmatmul.msk.f32.gmra.mxu2 %vm203_vm8, %v149_v62 }
 0x228   :  { %1318 = vrot.lane.b32.xlu0 %v1317_v21, %s1436_s26 }
 0x251   :  { %v246_v22 = vpop.permute.xlu2 %245 }
 0x252   :  { %1254 = vmatpush.xpose.msk.msrb.mxu1 %vm203_vm8, %v246_v22 }
 0x259   :  { %v244_v23 = vpop.permute.xlu1 %243  ;;  %v279_v24 = vpop.permute.xlu2 %278 }
 0x25a   :  { %1255 = vmatpush.xpose.msk.msrb.mxu1 %vm203_vm8, %v244_v23 }
 0x25d   :  { %1256 = vmatmul.msk.f32.vlgmr.msrb.gmra.mxu1 %vm203_vm8, %v178_v1 }
 0x261   :  { %v316_v25 = vpop.permute.xlu2 %315 }
 0x262   :  { %1262 = vmatpush.xpose.msk.msra.mxu3 %vm203_vm8, %v316_v25 }
 0x265   :  { %1257 = vmatmul.msk.f32.gmra.mxu1 %vm203_vm8, %v180_v3 }
 0x271   :  { %v351_v26 = vpop.permute.xlu1 %350 }
 0x272   :  { %1266 = vmatpush.xpose.msk.msrb.mxu0 %vm203_vm8, %v351_v26  ;;  %v384_v30 = vpop.permute.xlu2 %383 }
 0x279   :  { %v314_v27 = vpop.permute.xlu1 %313 }
 0x27a   :  { %v281_v28 = vpop.permute.xlu0 %280  ;;  %1263 = vmatpush.xpose.msk.msra.mxu3 %vm203_vm8, %v314_v27  ;;  %v1314_v32 = vpop.permute.xlu2 %1313 }
 0x27b   :  { %1258 = vmatpush.xpose.msk.msrb.mxu2 %vm203_vm8, %v281_v28  ;;  %v1315_v37 = vunpack.i.l.bf16 %v1314_v32  ;;  %v1316_v38 = vunpack.i.h.bf16 %v1314_v32 }
 0x27d   :  { %1264 = vmatmul.msk.f32.vlgmr.msra.gmra.mxu3 %vm203_vm8, %v1588_v2 }
 0x27f   :  { %1259 = vmatpush.xpose.msk.msrb.mxu2 %vm203_vm8, %v279_v24 }
 0x282   :  { %1260 = vmatmul.msk.f32.vlgmr.msrb.gmra.mxu2 %vm203_vm8, %v1593_v5  ;;  %v386_v29 = vpop.permute.xlu0 %385 }
 0x283   :  { %1270 = vmatpush.xpose.msk.msra.mxu1 %vm203_vm8, %v386_v29  ;;  %v1327_v29 = vpack.i.bf16 %v1599_v6, %v1601_v8 }
 0x284   :  { %v1324_v34 = vpop.permute.xlu1 %1323 }
 0x285   :  { %1265 = vmatmul.msk.f32.gmra.mxu3 %vm203_vm8, %v1599_v6  ;;  %v1326_v39 = vunpack.i.h.bf16 %v1324_v34  ;;  %v1325_v40 = vunpack.i.l.bf16 %v1324_v34 }
 0x287   :  { %1271 = vmatpush.xpose.msk.msra.mxu1 %vm203_vm8, %v384_v30 }
 0x28a   :  { %1261 = vmatmul.msk.f32.gmra.mxu2 %vm203_vm8, %v1601_v8  ;;  %1272 = vmatmul.msk.f32.vlgmr.msra.gmra.mxu1 %vm203_vm8, %v204_v17  ;;  %v349_v31 = vpop.permute.xlu0 %348 }
 0x28b   :  { %1267 = vmatpush.xpose.msk.msrb.mxu0 %vm203_vm8, %v349_v31 }
 0x28e   :  { %1268 = vmatmul.msk.f32.vlgmr.msrb.gmra.mxu0 %vm203_vm8, %v190_v9 }
 0x292   :  { %1273 = vmatmul.msk.f32.gmra.mxu1 %vm203_vm8, %v205_v12  ;;  %v1309_v33 = vpop.permute.xlu0 %1308 }
 0x293   :  { %v1310_v35 = vunpack.i.l.bf16 %v1309_v33  ;;  %v1311_v36 = vunpack.i.h.bf16 %v1309_v33 }
 0x295   :  { %553 = vmatpush.msra.mxu2 %v1310_v35  ;;  %588 = vmatpush.msrb.mxu3 %v1311_v36 }
 0x296   :  { %1269 = vmatmul.msk.f32.gmra.mxu0 %vm203_vm8, %v1591_v4 }
 0x297   :  { %554 = vmatpush.msra.mxu2 %v1315_v37  ;;  %589 = vmatpush.msrb.mxu3 %v1316_v38 }
 0x299   :  { %693 = vmatpush.msrb.mxu2 %v1325_v40  ;;  %728 = vmatpush.msra.mxu3 %v1326_v39 }
 0x29a   :  { %v1319_v41 = vpop.permute.xlu0 %1318 }
 0x29b   :  { %v1321_v42 = vunpack.i.h.bf16 %v1319_v41  ;;  %v1320_v43 = vunpack.i.l.bf16 %v1319_v41 }
 0x29d   :  { %694 = vmatpush.msrb.mxu2 %v1320_v43  ;;  %729 = vmatpush.msra.mxu3 %v1321_v42 }
 0x2a1   :  { %v237_v45 = vpop.f32.mrf.mxu2 }
 0x2a2   :  { %v238_v46 = vadd.f32 %v237_v45, %v206_v44 }
 0x2a4   :  { %v419_v47 = vsel %vm418_vm9, %v238_v46, -inf }
 0x2a5   :  { %420 = vmax.xlane.f32.xlu1 %v419_v47 }
 0x2a9   :  { %v240_v49 = vpop.f32.mrf.mxu2 }
 0x2aa   :  { %v241_v50 = vadd.f32 %v240_v49, %v207_v48 }
 0x2ac   :  { %v422_v51 = vsel %vm418_vm9, %v241_v50, -inf }
 0x2ad   :  { %423 = vmax.xlane.f32.xlu2 %v422_v51 }
 0x2da   :  { %v272_v52 = vpop.f32.mrf.mxu1 }
 0x2db   :  { %v273_v53 = vadd.f32 %v272_v52, %v206_v44 }
 0x2dd   :  { %v425_v54 = vsel %vm418_vm9, %v273_v53, -inf }
 0x2de   :  { %426 = vmax.xlane.f32.xlu0 %v425_v54 }
 0x2e2   :  { %v275_v1 = vpop.f32.mrf.mxu1 }
 0x2e3   :  { %v1667_v12 = vadd.f32 %v275_v1, %v207_v48 }
 0x2e5   :  { %v428_v18 = vsel %vm418_vm9, %v1667_v12, -inf }
 0x300   :  { %v342_v60 = vpop.f32.mrf.mxu3 }
 0x301   :  { %v1659_v62 = vadd.f32 %v342_v60, %v206_v44 }
 0x303   :  { %v437_v4 = vsel %vm418_vm9, %v1659_v62, -inf }
 0x305   :  { %v307_v55 = vpop.f32.mrf.mxu2 }
 0x306   :  { %v308_v56 = vadd.f32 %v307_v55, %v206_v44 }
 0x307   :  { %v412_v16 = vpop.f32.mrf.mxu1 }
 0x308   :  { %v431_v57 = vsel %vm418_vm9, %v308_v56, -inf  ;;  %v345_v7 = vpop.f32.mrf.mxu3  ;;  %v1678_v21 = vadd.f32 %v412_v16, %v206_v44 }
 0x309   :  { %432 = vmax.xlane.f32.xlu0 %v431_v57  ;;  %v1669_v13 = vadd.f32 %v345_v7, %v207_v48 }
 0x30a   :  { %v449_v5 = vsel %vm418_vm9, %v1678_v21, -inf }
 0x30b   :  { %v377_v58 = vpop.f32.mrf.mxu0  ;;  %v440_v17 = vsel %vm418_vm9, %v1669_v13, -inf }
 0x30c   :  { %v378_v59 = vadd.f32 %v377_v58, %v206_v44 }
 0x30d   :  { %v310_v27 = vpop.f32.mrf.mxu2 }
 0x30e   :  { %v443_v61 = vsel %vm418_vm9, %v378_v59, -inf  ;;  %v1694_v28 = vadd.f32 %v310_v27, %v207_v48 }
 0x30f   :  { %444 = vmax.xlane.f32.xlu1 %v443_v61  ;;  %v415_v23 = vpop.f32.mrf.mxu1 }
 0x310   :  { %v1686_v24 = vadd.f32 %v415_v23, %v207_v48  ;;  %v434_v30 = vsel %vm418_vm9, %v1694_v28, -inf }
 0x312   :  { %v452_v26 = vsel %vm418_vm9, %v1686_v24, -inf }
 0x313   :  { %v380_v63 = vpop.f32.mrf.mxu0 }
 0x314   :  { %v1661_v0 = vadd.f32 %v380_v63, %v207_v48 }
 0x316   :  { %v446_v3 = vsel %vm418_vm9, %v1661_v0, -inf }
 0x317   :  { %447 = vmax.xlane.f32.xlu2 %v446_v3  ;;  %438 = vmax.xlane.f32.xlu1 %v437_v4 }
 0x318   :  { %v421_v9 = vpop.xlane.xlu1 %420 }
 0x319   :  { %v455_v11 = vsub.f32 %v238_v46, %v421_v9 }
 0x31b   :  { %v467_v15 = vmul.f32 1.442695, %v455_v11 }
 0x31d   :  { %1349 = vpow2.f32 %v467_v15  ;;  %1333 = vrot.lane.b32.xlu0 %v1332_v14, %s1436_s26 }
 0x31f   :  { %441 = vmax.xlane.f32.xlu2 %v440_v17  ;;  %429 = vmax.xlane.f32.xlu1 %v428_v18 }
 0x320   :  { %v424_v19 = vpop.xlane.xlu2 %423 }
 0x321   :  { %v456_v20 = vsub.f32 %v241_v50, %v424_v19 }
 0x323   :  { %v1680_v22 = vpop.eup %1349  ;;  %v469_v2 = vmul.f32 1.442695, %v456_v20 }
 0x324   :  { %1274 = vmatmul.msk.f32.vlgmr.msra.gmra.mxu2 %vm418_vm9, %v1680_v22 }
 0x325   :  { %1351 = vpow2.f32 %v469_v2 }
 0x327   :  { %450 = vmax.xlane.f32.xlu1 %v449_v5 }
 0x32b   :  { %v1688_v25 = vpop.eup %1351 }
 0x32c   :  { %1275 = vmatmul.msk.f32.gmra.mxu2 %vm418_vm9, %v1688_v25  ;;  %v494_v27 = vsel %vm418_vm9, %v1688_v25, 0.0 }
 0x32f   :  { %453 = vmax.xlane.f32.xlu1 %v452_v26  ;;  %v491_v26 = vsel %vm418_vm9, %v1680_v22, 0.0 }
 0x337   :  { %1328 = vrot.lane.b32.xlu2 %v1327_v29, %s1436_s26  ;;  %435 = vmax.xlane.f32.xlu1 %v434_v30 }
 0x351   :  { %v427_v31 = vpop.xlane.xlu0 %426 }
 0x352   :  { %v457_v32 = vsub.f32 %v273_v53, %v427_v31 }
 0x354   :  { %v471_v33 = vmul.f32 1.442695, %v457_v32 }
 0x356   :  { %1353 = vpow2.f32 %v471_v33 }
 0x35c   :  { %v1354_v34 = vpop.eup %1353 }
 0x35d   :  { %1276 = vmatmul.msk.f32.vlgmr.msrb.gmra.mxu3 %vm418_vm9, %v1354_v34  ;;  %v497_v35 = vsel %vm418_vm9, %v1354_v34, 0.0 }
 0x35e   :  { %498 = vadd.xlane.f32.xlu0 %v497_v35 }
 0x37c   :  { %v433_v36 = vpop.xlane.xlu0 %432 }
 0x37d   :  { %v459_v37 = vsub.f32 %v308_v56, %v433_v36 }
 0x37f   :  { %v475_v38 = vmul.f32 1.442695, %v459_v37 }
 0x381   :  { %1355 = vpow2.f32 %v475_v38 }
 0x382   :  { %v445_v6 = vpop.xlane.xlu1 %444 }
 0x383   :  { %v463_v8 = vsub.f32 %v378_v59, %v445_v6 }
 0x385   :  { %v483_v39 = vmul.f32 1.442695, %v463_v8 }
 0x387   :  { %v1356_v40 = vpop.eup %1355  ;;  %1357 = vpow2.f32 %v483_v39 }
 0x388   :  { %v503_v41 = vsel %vm418_vm9, %v1356_v40, 0.0 }
 0x389   :  { %504 = vadd.xlane.f32.xlu2 %v503_v41 }
 0x38a   :  { %v448_v42 = vpop.xlane.xlu2 %447  ;;  %v439_v43 = vpop.xlane.xlu1 %438 }
 0x38b   :  { %v464_v44 = vsub.f32 %v1661_v0, %v448_v42  ;;  %v461_v45 = vsub.f32 %v1659_v62, %v439_v43 }
 0x38d   :  { %v1358_v46 = vpop.eup %1357  ;;  %v485_v47 = vmul.f32 1.442695, %v464_v44  ;;  %v479_v48 = vmul.f32 1.442695, %v461_v45 }
 0x38e   :  { %1282 = vmatmul.msk.f32.vlgmr.msrb.gmra.mxu2 %vm418_vm9, %v1358_v46  ;;  %v515_v49 = vsel %vm418_vm9, %v1358_v46, 0.0 }
 0x38f   :  { %1359 = vpow2.f32 %v485_v47  ;;  %516 = vadd.xlane.f32.xlu1 %v515_v49  ;;  %v1334_v59 = vpop.permute.xlu0 %1333 }
 0x390   :  { %1361 = vpow2.f32 %v479_v48  ;;  %v1335_v3 = vunpack.i.l.bf16 %v1334_v59  ;;  %v1336_v9 = vunpack.i.h.bf16 %v1334_v59 }
 0x392   :  { %v442_v50 = vpop.xlane.xlu2 %441  ;;  %v430_v51 = vpop.xlane.xlu1 %429 }
 0x393   :  { %v458_v52 = vsub.f32 %v1667_v12, %v430_v51  ;;  %v462_v56 = vsub.f32 %v1669_v13, %v442_v50 }
 0x395   :  { %v1360_v53 = vpop.eup %1359  ;;  %v473_v54 = vmul.f32 1.442695, %v458_v52  ;;  %v481_v60 = vmul.f32 1.442695, %v462_v56 }
 0x396   :  { %v1362_v55 = vpop.eup %1361  ;;  %1283 = vmatmul.msk.f32.gmra.mxu2 %vm418_vm9, %v1360_v53  ;;  %v518_v57 = vsel %vm418_vm9, %v1360_v53, 0.0 }
 0x397   :  { %v509_v58 = vsel %vm418_vm9, %v1362_v55, 0.0  ;;  %519 = vadd.xlane.f32.xlu0 %v518_v57  ;;  %1363 = vpow2.f32 %v473_v54 }
 0x398   :  { %510 = vadd.xlane.f32.xlu1 %v509_v58  ;;  %1365 = vpow2.f32 %v481_v60 }
 0x39a   :  { %v1329_v61 = vpop.permute.xlu2 %1328  ;;  %v451_v62 = vpop.xlane.xlu1 %450 }
 0x39b   :  { %v1331_v63 = vunpack.i.h.bf16 %v1329_v61  ;;  %v1330_v0 = vunpack.i.l.bf16 %v1329_v61  ;;  %v465_v1 = vsub.f32 %v1678_v21, %v451_v62 }
 0x39d   :  { %v487_v4 = vmul.f32 1.442695, %v465_v1  ;;  %623 = vmatpush.msra.mxu0 %v1330_v0  ;;  %658 = vmatpush.msrb.mxu1 %v1331_v63  ;;  %v1364_v7 = vpop.eup %1363 }
 0x39e   :  { %1277 = vmatmul.msk.f32.gmra.mxu3 %vm418_vm9, %v1364_v7  ;;  %v500_v11 = vsel %vm418_vm9, %v1364_v7, 0.0  ;;  %v1366_v14 = vpop.eup %1365 }
 0x39f   :  { %1367 = vpow2.f32 %v487_v4  ;;  %624 = vmatpush.msra.mxu0 %v1335_v3  ;;  %659 = vmatpush.msrb.mxu1 %v1336_v9  ;;  %v512_v17 = vsel %vm418_vm9, %v1366_v14, 0.0 }
 0x3a0   :  { %501 = vadd.xlane.f32.xlu1 %v500_v11  ;;  %1278 = vmatmul.msk.f32.vlgmr.msra.gmra.mxu0 %vm418_vm9, %v1356_v40 }
 0x3a1   :  { %1280 = vmatmul.msk.f32.vlgmr.msrb.gmra.mxu1 %vm418_vm9, %v1362_v55 }
 0x3a2   :  { %v454_v12 = vpop.xlane.xlu1 %453 }
 0x3a3   :  { %v466_v13 = vsub.f32 %v1686_v24, %v454_v12 }
 0x3a5   :  { %v1368_v15 = vpop.eup %1367  ;;  %v489_v16 = vmul.f32 1.442695, %v466_v13 }
 0x3a6   :  { %1284 = vmatmul.msk.f32.vlgmr.msra.gmra.mxu3 %vm418_vm9, %v1368_v15  ;;  %v521_v5 = vsel %vm418_vm9, %v1368_v15, 0.0 }
 0x3a7   :  { %1369 = vpow2.f32 %v489_v16  ;;  %v1733_v8 = vpop.f32.mrf.mxu2 }
 0x3a8   :  { %513 = vadd.xlane.f32.xlu1 %v512_v17 }
 0x3a9   :  { %1281 = vmatmul.msk.f32.gmra.mxu1 %vm418_vm9, %v1366_v14 }
 0x3aa   :  { %v436_v18 = vpop.xlane.xlu1 %435 }
 0x3ab   :  { %v460_v19 = vsub.f32 %v1694_v28, %v436_v18 }
 0x3ad   :  { %v1370_v20 = vpop.eup %1369  ;;  %v477_v21 = vmul.f32 1.442695, %v460_v19 }
 0x3ae   :  { %v524_v2 = vsel %vm418_vm9, %v1370_v20, 0.0  ;;  %1285 = vmatmul.msk.f32.gmra.mxu3 %vm418_vm9, %v1370_v20 }
 0x3af   :  { %1371 = vpow2.f32 %v477_v21  ;;  %525 = vadd.xlane.f32.xlu2 %v524_v2  ;;  %v1735_v44 = vpop.f32.mrf.mxu2 }
 0x3b0   :  { %522 = vadd.xlane.f32.xlu1 %v521_v5 }
 0x3b5   :  { %v1372_v23 = vpop.eup %1371 }
 0x3b6   :  { %1279 = vmatmul.msk.f32.gmra.mxu0 %vm418_vm9, %v1372_v23  ;;  %v506_v24 = vsel %vm418_vm9, %v1372_v23, 0.0 }
 0x3b7   :  { %507 = vadd.xlane.f32.xlu0 %v506_v24 }
 0x3b8   :  { %492 = vadd.xlane.f32.xlu1 %v491_v26 }
 0x3bf   :  { %495 = vadd.xlane.f32.xlu0 %v494_v27 }
 0x3d1   :  { %v499_v28 = vpop.xlane.xlu0 %498 }
 0x3d2   :  { %1373 = vrcp.f32 %v499_v28  ;;  %v776_v32 = vand.u32 2147483648, %v499_v28  ;;  %v774_v34 = vand.u32 2147483647, %v499_v28  ;;  %vm770_vm11 = vweird.f32 %v499_v28 }
 0x3d4   :  { %v777_v36 = vor.u32 1.1754944e-38, %v776_v32  ;;  %vm775_vm13 = vcmp.eq.f32.partialorder %v774_v34, 8.507059e+37 }
 0x3d8   :  { %v1374_v29 = vpop.eup %1373 }
 0x3d9   :  { %v766_v30 = vmul.f32 %v1374_v29, %v499_v28  ;;  %vm771_vm10 = vweird.f32 %v1374_v29 }
 0x3da   :  { %vm772_vm12 = vmor %vm770_vm11, %vm771_vm10 }
 0x3db   :  { %v767_v31 = vsub.f32 1.0, %v766_v30 }
 0x3dd   :  { %v768_v33 = vmul.f32 %v1374_v29, %v767_v31 }
 0x3df   :  { %v769_v35 = vadd.f32 %v1374_v29, %v768_v33 }
 0x3e0   :  { %v591_v37 = vpop.f32.mrf.mxu3 }
 0x3e1   :  { %v773_v22 = vsel %vm772_vm12, %v1374_v29, %v769_v35 }
 0x3e2   :  { %v778_v38 = vsel %vm775_vm13, %v777_v36, %v773_v22 }
 0x3e3   :  { %v907_v6 = vmul.f32 %v778_v38, %v591_v37 }
 0x3e5   :  { %919 = vrot.lane.b32.xlu2 %v907_v6, %s1434_s24 }
 0x3fc   :  { %v505_v25 = vpop.xlane.xlu2 %504 }
 0x3fd   :  { %1375 = vrcp.f32 %v505_v25  ;;  %v804_v1 = vand.u32 2147483648, %v505_v25  ;;  %vm798_vm5 = vweird.f32 %v505_v25  ;;  %v802_v7 = vand.u32 2147483647, %v505_v25 }
 0x3ff   :  { %v805_v18 = vor.u32 1.1754944e-38, %v804_v1  ;;  %vm803_vm11 = vcmp.eq.f32.partialorder %v802_v7, 8.507059e+37 }
 0x402   :  { %v517_v39 = vpop.xlane.xlu1 %516 }
 0x403   :  { %1377 = vrcp.f32 %v517_v39  ;;  %v1376_v40 = vpop.eup %1375  ;;  %v860_v48 = vand.u32 2147483648, %v517_v39  ;;  %v858_v51 = vand.u32 2147483647, %v517_v39  ;;  %vm854_vm15 = vweird.f32 %v517_v39 }
 0x404   :  { %v794_v42 = vmul.f32 %v1376_v40, %v505_v25  ;;  %vm799_vm3 = vweird.f32 %v1376_v40 }
 0x405   :  { %v861_v53 = vor.u32 1.1754944e-38, %v860_v48  ;;  %vm859_vm2 = vcmp.eq.f32.partialorder %v858_v51, 8.507059e+37  ;;  %vm1745_vm6 = vmor %vm798_vm5, %vm799_vm3 }
 0x406   :  { %v795_v49 = vsub.f32 1.0, %v794_v42 }
 0x408   :  { %v796_v56 = vmul.f32 %v1376_v40, %v795_v49 }
 0x409   :  { %v1378_v41 = vpop.eup %1377 }
 0x40a   :  { %v850_v43 = vmul.f32 %v1378_v41, %v517_v39  ;;  %v1737_v47 = vpop.xlane.xlu0 %519  ;;  %vm855_vm14 = vweird.f32 %v1378_v41  ;;  %v797_v0 = vadd.f32 %v1376_v40, %v796_v56 }
 0x40b   :  { %v511_v45 = vpop.xlane.xlu1 %510  ;;  %vm856_vm1 = vmor %vm854_vm15, %vm855_vm14  ;;  %v874_v25 = vand.u32 2147483648, %v1737_v47  ;;  %vm868_vm3 = vweird.f32 %v1737_v47  ;;  %v872_v39 = vand.u32 2147483647, %v1737_v47 }
 0x40c   :  { %v851_v46 = vsub.f32 1.0, %v850_v43  ;;  %1379 = vrcp.f32 %v511_v45  ;;  %v832_v9 = vand.u32 2147483648, %v511_v45  ;;  %vm826_vm7 = vweird.f32 %v511_v45 }
 0x40d   :  { %1381 = vrcp.f32 %v1737_v47  ;;  %v830_v13 = vand.u32 2147483647, %v511_v45  ;;  %v801_v15 = vsel %vm1745_vm6, %v1376_v40, %v797_v0  ;;  %vm873_vm5 = vcmp.eq.f32.partialorder %v872_v39, 8.507059e+37  ;;  %v972_v39 = vld [vmem:[%s2004_s5 + $0x10] sm:$0xff] }
 0x40e   :  { %v852_v50 = vmul.f32 %v1378_v41, %v851_v46  ;;  %v833_v21 = vor.u32 1.1754944e-38, %v832_v9  ;;  %v806_v5 = vsel %vm803_vm11, %v805_v18, %v801_v15 }
 0x40f   :  { %vm831_vm12 = vcmp.eq.f32.partialorder %v830_v13, 8.507059e+37 }
 0x410   :  { %v853_v52 = vadd.f32 %v1378_v41, %v852_v50 }
 0x411   :  { %v696_v58 = vpop.f32.mrf.mxu2 }
 0x412   :  { %v1380_v54 = vpop.eup %1379  ;;  %v857_v55 = vsel %vm856_vm1, %v1378_v41, %v853_v52 }
 0x413   :  { %v822_v57 = vmul.f32 %v1380_v54, %v511_v45  ;;  %v862_v59 = vsel %vm859_vm2, %v861_v53, %v857_v55  ;;  %v502_v60 = vpop.xlane.xlu1 %501  ;;  %v1740_v62 = vpop.eup %1381  ;;  %vm827_vm4 = vweird.f32 %v1380_v54  ;;  %v875_v45 = vor.u32 1.1754944e-38, %v874_v25  ;;  %v973_v25 = vld [vmem:[%s2004_s5 + $0x18] sm:$0xff] }
 0x414   :  { %v913_v61 = vmul.f32 %v862_v59, %v696_v58  ;;  %1383 = vrcp.f32 %v502_v60  ;;  %v864_v4 = vmul.f32 %v1740_v62, %v1737_v47  ;;  %vm828_vm10 = vmor %vm826_vm7, %vm827_vm4  ;;  %v788_v27 = vand.u32 2147483647, %v502_v60 }
 0x415   :  { %v823_v63 = vsub.f32 1.0, %v822_v57  ;;  %v790_v28 = vand.u32 2147483648, %v502_v60  ;;  %vm784_vm14 = vweird.f32 %v502_v60  ;;  %vm869_vm2 = vweird.f32 %v1740_v62 }
 0x416   :  { %943 = vrot.lane.b32.xlu2 %v913_v61, %s1433_s23  ;;  %v865_v20 = vsub.f32 1.0, %v864_v4  ;;  %vm789_vm1 = vcmp.eq.f32.partialorder %v788_v27, 8.507059e+37  ;;  %vm870_vm4 = vmor %vm868_vm3, %vm869_vm2 }
 0x417   :  { %v824_v3 = vmul.f32 %v1380_v54, %v823_v63  ;;  %v791_v34 = vor.u32 1.1754944e-38, %v790_v28 }
 0x418   :  { %v866_v32 = vmul.f32 %v1740_v62, %v865_v20 }
 0x419   :  { %v825_v12 = vadd.f32 %v1380_v54, %v824_v3  ;;  %v699_v47 = vpop.f32.mrf.mxu2 }
 0x41a   :  { %v1384_v14 = vpop.eup %1383  ;;  %v867_v38 = vadd.f32 %v1740_v62, %v866_v32 }
 0x41b   :  { %v780_v16 = vmul.f32 %v1384_v14, %v502_v60  ;;  %v1751_v17 = vpop.xlane.xlu1 %513  ;;  %v829_v19 = vsel %vm828_vm10, %v1380_v54, %v825_v12  ;;  %vm785_vm13 = vweird.f32 %v1384_v14 }
 0x41c   :  { %1385 = vrcp.f32 %v1751_v17  ;;  %v834_v26 = vsel %vm831_vm12, %v833_v21, %v829_v19  ;;  %vm786_vm15 = vmor %vm784_vm14, %vm785_vm13  ;;  %v871_v43 = vsel %vm870_vm4, %v1740_v62, %v867_v38  ;;  %v846_v4 = vand.u32 2147483648, %v1751_v17 }
 0x41d   :  { %v781_v2 = vsub.f32 1.0, %v780_v16  ;;  %v626_v23 = vpop.f32.mrf.mxu0  ;;  %v876_v50 = vsel %vm873_vm5, %v875_v45, %v871_v43  ;;  %vm840_vm13 = vweird.f32 %v1751_v17  ;;  %v844_v12 = vand.u32 2147483647, %v1751_v17  ;;  %v970_v45 = vld [vmem:[%s2004_s5] sm:$0xff] }
 0x41e   :  { %v661_v24 = vpop.f32.mrf.mxu1  ;;  %v909_v29 = vmul.f32 %v806_v5, %v626_v23  ;;  %v914_v54 = vmul.f32 %v876_v50, %v699_v47  ;;  %v847_v21 = vor.u32 1.1754944e-38, %v846_v4 }
 0x41f   :  { %v911_v30 = vmul.f32 %v834_v26, %v661_v24  ;;  %v782_v31 = vmul.f32 %v1384_v14, %v781_v2  ;;  %vm845_vm2 = vcmp.eq.f32.partialorder %v844_v12, 8.507059e+37 }
 0x420   :  { %927 = vrot.lane.b32.xlu1 %v909_v29, %s1438_s14 }
 0x421   :  { %935 = vrot.lane.b32.xlu0 %v911_v30, %s1437_s1  ;;  %v783_v33 = vadd.f32 %v1384_v14, %v782_v31  ;;  %v594_v40 = vpop.f32.mrf.mxu3 }
 0x422   :  { %v1757_v35 = vpop.xlane.xlu2 %525  ;;  %v1759_v37 = vpop.eup %1385 }
 0x423   :  { %v787_v36 = vsel %vm786_vm15, %v1384_v14, %v783_v33  ;;  %v523_v22 = vpop.xlane.xlu1 %522  ;;  %v836_v41 = vmul.f32 %v1759_v37, %v1751_v17  ;;  %vm841_vm11 = vweird.f32 %v1759_v37  ;;  %v902_v26 = vand.u32 2147483648, %v1757_v35 }
 0x424   :  { %v792_v6 = vsel %vm789_vm1, %v791_v34, %v787_v36  ;;  %1387 = vrcp.f32 %v523_v22  ;;  %v888_v56 = vand.u32 2147483648, %v523_v22  ;;  %v886_v59 = vand.u32 2147483647, %v523_v22  ;;  %vm1782_vm14 = vmor %vm840_vm13, %vm841_vm11 }
 0x425   :  { %1389 = vrcp.f32 %v1757_v35  ;;  %v908_v42 = vmul.f32 %v792_v6, %v594_v40  ;;  %v837_v51 = vsub.f32 1.0, %v836_v41  ;;  %vm882_vm7 = vweird.f32 %v523_v22  ;;  %v974_v6 = vld [vmem:[%s2004_s5 + $0x20] sm:$0xff]  ;;  %v971_v40 = vld [vmem:[%s2004_s5 + $0x8] sm:$0xff] }
 0x426   :  { %v889_v63 = vor.u32 1.1754944e-38, %v888_v56  ;;  %vm887_vm12 = vcmp.eq.f32.partialorder %v886_v59, 8.507059e+37  ;;  %v664_v29 = vpop.f32.mrf.mxu1  ;;  %v900_v30 = vand.u32 2147483647, %v1757_v35  ;;  %v903_v34 = vor.u32 1.1754944e-38, %v902_v26 }
 0x427   :  { %v838_v57 = vmul.f32 %v1759_v37, %v837_v51  ;;  %v1339_v26 = vld [vmem:[%s2005_s6] ss:$0 sm:$0xff] }
 0x428   :  { %921 = vrot.lane.b32.xlu1 %v908_v42, %s1434_s24 }
 0x429   :  { %v839_v1 = vadd.f32 %v1759_v37, %v838_v57  ;;  %v731_v7 = vpop.f32.mrf.mxu3 }
 0x42a   :  { %v1388_v46 = vpop.eup %1387  ;;  %v508_v48 = vpop.xlane.xlu0 %507 }
 0x42b   :  { %v1771_v49 = vpop.eup %1389  ;;  %v878_v52 = vmul.f32 %v1388_v46, %v523_v22  ;;  %1391 = vrcp.f32 %v508_v48  ;;  %vm883_vm6 = vweird.f32 %v1388_v46  ;;  %v818_v14 = vand.u32 2147483648, %v508_v48  ;;  %v493_v38 = vpop.xlane.xlu1 %492 }
 0x42c   :  { %v892_v55 = vmul.f32 %v1771_v49, %v1757_v35  ;;  %vm884_vm10 = vmor %vm882_vm7, %vm883_vm6  ;;  %v816_v19 = vand.u32 2147483647, %v508_v48  ;;  %v843_v20 = vsel %vm1782_vm14, %v1759_v37, %v839_v1  ;;  %vm812_vm1 = vweird.f32 %v508_v48 }
 0x42d   :  { %v879_v53 = vsub.f32 1.0, %v878_v52  ;;  %vm897_vm3 = vweird.f32 %v1771_v49  ;;  %v819_v17 = vor.u32 1.1754944e-38, %v818_v14  ;;  %v848_v5 = vsel %vm845_vm2, %v847_v21, %v843_v20 }
 0x42e   :  { %v893_v62 = vsub.f32 1.0, %v892_v55  ;;  %vm817_vm5 = vcmp.eq.f32.partialorder %v816_v19, 8.507059e+37  ;;  %vm896_vm6 = vweird.f32 %v1757_v35  ;;  %v912_v32 = vmul.f32 %v848_v5, %v664_v29  ;;  %v975_v35 = vld [vmem:[%s2004_s5 + $0x28] sm:$0xff] }
 0x42f   :  { %v880_v58 = vmul.f32 %v1388_v46, %v879_v53  ;;  %vm898_vm7 = vmor %vm896_vm6, %vm897_vm3  ;;  %992 = vmatpush.msrb.mxu0 %v975_v35  ;;  %1393 = vrcp.f32 %v493_v38  ;;  %v748_v52 = vand.u32 2147483648, %v493_v38  ;;  %v746_v47 = vand.u32 2147483647, %v493_v38 }
 0x430   :  { %945 = vrot.lane.b32.xlu1 %v914_v54, %s1433_s23  ;;  %v894_v16 = vmul.f32 %v1771_v49, %v893_v62 }
 0x431   :  { %v1392_v60 = vpop.eup %1391  ;;  %v881_v61 = vadd.f32 %v1388_v46, %v880_v58  ;;  %v734_v22 = vpop.f32.mrf.mxu3  ;;  %993 = vmatpush.msrb.mxu0 %v974_v6  ;;  %v749_v56 = vor.u32 1.1754944e-38, %v748_v52  ;;  %vm747_vm14 = vcmp.eq.f32.partialorder %v746_v47, 8.507059e+37  ;;  %v1074_v52 = vld [vmem:[%s2008_s9 + $0x28] sm:$0xff]  ;;  %v1071_v47 = vld [vmem:[%s2008_s9 + $0x10] sm:$0xff] }
 0x432   :  { %v808_v0 = vmul.f32 %v1392_v60, %v508_v48  ;;  %vm813_vm15 = vweird.f32 %v1392_v60  ;;  %v895_v23 = vadd.f32 %v1771_v49, %v894_v16  ;;  %v496_v43 = vpop.xlane.xlu0 %495 }
 0x433   :  { %v885_v3 = vsel %vm884_vm10, %v1388_v46, %v881_v61  ;;  %vm814_vm4 = vmor %vm812_vm1, %vm813_vm15  ;;  %v629_v27 = vpop.f32.mrf.mxu0  ;;  %vm901_vm10 = vcmp.eq.f32.partialorder %v900_v30, 8.507059e+37  ;;  %994 = vmatpush.msrb.mxu0 %v973_v25  ;;  %1395 = vrcp.f32 %v496_v43  ;;  %v762_v1 = vand.u32 2147483648, %v496_v43 }
 0x434   :  { %v890_v9 = vsel %vm887_vm12, %v889_v63, %v885_v3  ;;  %v809_v11 = vsub.f32 1.0, %v808_v0  ;;  %v899_v33 = vsel %vm898_vm7, %v1771_v49, %v895_v23  ;;  %vm742_vm12 = vweird.f32 %v493_v38 }
 0x435   :  { %v915_v13 = vmul.f32 %v890_v9, %v731_v7  ;;  %v904_v36 = vsel %vm901_vm10, %v903_v34, %v899_v33  ;;  %995 = vmatpush.msrb.mxu0 %v972_v39  ;;  %v1394_v41 = vpop.eup %1393  ;;  %vm961_vm1 = vcmask 195584   ;;  %vm756_vm2 = vweird.f32 %v496_v43 }
 0x436   :  { %v810_v18 = vmul.f32 %v1392_v60, %v809_v11  ;;  %v916_v37 = vmul.f32 %v904_v36, %v734_v22  ;;  %v738_v42 = vmul.f32 %v1394_v41, %v493_v38  ;;  %vm743_vm11 = vweird.f32 %v1394_v41 }
 0x437   :  { %951 = vrot.lane.b32.xlu0 %v915_v13, %s1439_s15  ;;  %996 = vmatpush.msrb.mxu0 %v971_v40  ;;  %vm744_vm13 = vmor %vm742_vm12, %vm743_vm11  ;;  %v760_v4 = vand.u32 2147483647, %v496_v43  ;;  %v763_v11 = vor.u32 1.1754944e-38, %v762_v1  ;;  %v1155_v1 = vld [vmem:[%s2010_s11 + $0x60] sm:$0xff] }
 0x438   :  { %v811_v2 = vadd.f32 %v1392_v60, %v810_v18  ;;  %v739_v46 = vsub.f32 1.0, %v738_v42 }
 0x439   :  { %997 = vmatpush.msrb.mxu0 %v970_v45  ;;  %v1396_v49 = vpop.eup %1395  ;;  %vm761_vm6 = vcmp.eq.f32.partialorder %v760_v4, 8.507059e+37  ;;  %v1080_v45 = vld [vmem:[%s2008_s9 + $0x58] sm:$0xff]  ;;  %v1165_v4 = vld [vmem:[%s2010_s11 + $0xb0] sm:$0xff] }
 0x43a   :  { %v815_v24 = vsel %vm814_vm4, %v1392_v60, %v811_v2  ;;  %v740_v48 = vmul.f32 %v1394_v41, %v739_v46  ;;  %v752_v51 = vmul.f32 %v1396_v49, %v496_v43  ;;  %vm757_vm15 = vweird.f32 %v1396_v49  ;;  %v1079_v43 = vld [vmem:[%s2008_s9 + $0x50] sm:$0xff]  ;;  %1126 = vmatpush.msra.mxu2 %v1080_v45  ;;  %v1077_v46 = vld [vmem:[%s2008_s9 + $0x40] sm:$0xff] }
 0x43b   :  { %v820_v28 = vsel %vm817_vm5, %v819_v17, %v815_v24  ;;  %vm758_vm3 = vmor %vm756_vm2, %vm757_vm15  ;;  %vm964_vm4 = vcmask 261120   ;;  %vm967_vm5 = vcmask 326656   ;;  %1103 = vmatpush.msra.mxu1 %v1079_v43  ;;  %v1160_v43 = vld [vmem:[%s2010_s11 + $0x88] sm:$0xff]  ;;  %v1159_v45 = vld [vmem:[%s2010_s11 + $0x80] sm:$0xff] }
 0x43c   :  { %v910_v31 = vmul.f32 %v820_v28, %v629_v27  ;;  %v741_v50 = vadd.f32 %v1394_v41, %v740_v48  ;;  %v753_v54 = vsub.f32 1.0, %v752_v51  ;;  %v1401_v27 = vld [vmem:[%s1999_s0] sm:$0xff]  ;;  %v1078_v48 = vld [vmem:[%s2008_s9 + $0x48] sm:$0xff] }
 0x43d   :  { %1104 = vmatpush.msra.mxu1 %v1077_v46  ;;  %1127 = vmatpush.msra.mxu2 %v1078_v48  ;;  %v1073_v51 = vld [vmem:[%s2008_s9 + $0x20] sm:$0xff] }
 0x43e   :  { %929 = vrot.lane.b32.xlu2 %v910_v31, %s1438_s14  ;;  %v745_v55 = vsel %vm744_vm13, %v1394_v41, %v741_v50  ;;  %v754_v58 = vmul.f32 %v1396_v49, %v753_v54  ;;  %v1076_v50 = vld [vmem:[%s2008_s9 + $0x38] sm:$0xff]  ;;  %v1069_v54 = vld [vmem:[%s2008_s9] sm:$0xff]  ;;  %vm1171_vm13 = vcmask 523264  }
 0x43f   :  { %937 = vrot.lane.b32.xlu0 %v912_v32, %s1437_s1  ;;  %v920_v53 = vpop.permute.xlu2 %919  ;;  %v750_v57 = vsel %vm747_vm14, %v749_v56, %v745_v55  ;;  %v1402_v32 = vld [vmem:[%s1999_s0 + $0x8] sm:$0xff]  ;;  %1128 = vmatpush.msra.mxu2 %v1076_v50  ;;  %v1081_v46 = vld [vmem:[%s2009_s10] sm:$0x3] }
 0x440   :  { %v905_v60 = vmul.f32 %v750_v57, %v1733_v8  ;;  %v755_v63 = vadd.f32 %v1396_v49, %v754_v58  ;;  %v1070_v55 = vld [vmem:[%s2008_s9 + $0x8] sm:$0xff]  ;;  %v1083_v48 = vperm.slane %v1081_v46, 0 }
 0x441   :  { %1129 = vmatpush.msra.mxu2 %v1074_v52  ;;  %v1084_v52 = vperm.slane %v1081_v46, 1 }
 0x442   :  { %v957_v0 = vsel %vm203_vm8, %v905_v60, %v920_v53  ;;  %v759_v9 = vsel %vm758_vm3, %v1396_v49, %v755_v63  ;;  %v1075_v49 = vld [vmem:[%s2008_s9 + $0x30] sm:$0xff]  ;;  %v1072_v53 = vld [vmem:[%s2008_s9 + $0x18] sm:$0xff]  ;;  %s1440_s9 = smov [#allocation2]  }
 0x443   :  { %v764_v13 = vsel %vm761_vm6, %v763_v11, %v759_v9  ;;  %1105 = vmatpush.msra.mxu1 %v1075_v49  ;;  %1130 = vmatpush.msra.mxu2 %v1072_v53  ;;  %v1157_v60 = vld [vmem:[%s2010_s11 + $0x70] sm:$0xff] }
 0x444   :  { %v906_v18 = vmul.f32 %v764_v13, %v1735_v44  ;;  %v1152_v13 = vld [vmem:[%s2010_s11 + $0x48] sm:$0xff] }
 0x445   :  { %1106 = vmatpush.msra.mxu1 %v1073_v51  ;;  %1131 = vmatpush.msra.mxu2 %v1070_v55 }
 0x446   :  { %953 = vrot.lane.b32.xlu2 %v916_v37, %s1439_s15 }
 0x447   :  { %1107 = vmatpush.msra.mxu1 %v1071_v47 }
 0x449   :  { %1108 = vmatpush.msra.mxu1 %v1069_v54 }
 0x470   :  { %v944_v61 = vpop.permute.xlu2 %943 }
 0x492   :  { %v928_v59 = vpop.permute.xlu1 %927 }
 0x493   :  { %v936_v62 = vpop.permute.xlu0 %935  ;;  %v959_v3 = vsel %vm418_vm9, %v957_v0, %v928_v59  ;;  %v1158_v59 = vld [vmem:[%s2010_s11 + $0x78] sm:$0xff] }
 0x494   :  { %v962_v7 = vsel %vm961_vm1, %v959_v3, %v936_v62  ;;  %1178 = vmatpush.msrb.mxu3 %v1158_v59  ;;  %v1166_v3 = vld [vmem:[%s2010_s11 + $0xb8] sm:$0xff] }
 0x495   :  { %v965_v15 = vsel %vm964_vm4, %v962_v7, %v944_v61  ;;  %v1156_v61 = vld [vmem:[%s2010_s11 + $0x68] sm:$0xff]  ;;  %1209 = vmatpush.msra.mxu0 %v1166_v3 }
 0x496   :  { %1179 = vmatpush.msrb.mxu3 %v1157_v60 }
 0x497   :  { %1210 = vmatpush.msra.mxu0 %v1165_v4 }
 0x498   :  { %v930_v12 = vpop.permute.xlu2 %929  ;;  %1180 = vmatpush.msrb.mxu3 %v1156_v61  ;;  %v1342_v61 = vld [vmem:[%s2011_s12] ss:$0 sm:$0xff]  ;;  %s1441_s12 = smov 128  }
 0x49a   :  { %v922_v8 = vpop.permute.xlu1 %921  ;;  %1181 = vmatpush.msrb.mxu3 %v1155_v1 }
 0x49b   :  { %v958_v19 = vsel %vm203_vm8, %v906_v18, %v922_v8  ;;  %v1153_v8 = vld [vmem:[%s2010_s11 + $0x50] sm:$0xff] }
 0x49c   :  { %v960_v21 = vsel %vm418_vm9, %v958_v19, %v930_v12  ;;  %v1340_v19 = vld [vmem:[%s2006_s7] ss:$0 sm:$0xff] }
 0x4a0   :  { %v954_v5 = vpop.permute.xlu2 %953 }
 0x4a2   :  { %v946_v2 = vpop.permute.xlu1 %945 }
 0x4a9   :  { %v952_v14 = vpop.permute.xlu0 %951 }
 0x4aa   :  { %v968_v16 = vsel %vm967_vm5, %v965_v15, %v952_v14  ;;  %v1151_v15 = vld [vmem:[%s2010_s11 + $0x40] sm:$0xff] }
 0x4ab   :  { %1286 = vmatmul.msk.f32.vlgmr.msrb.gmra.mxu0 %vm49_vm0, %v968_v16 }
 0x4b1   :  { %v938_v20 = vpop.permute.xlu0 %937 }
 0x4b2   :  { %v963_v17 = vsel %vm961_vm1, %v960_v21, %v938_v20  ;;  %v1150_v20 = vld [vmem:[%s2010_s11 + $0x38] sm:$0xff] }
 0x4b3   :  { %v966_v23 = vsel %vm964_vm4, %v963_v17, %v946_v2 }
 0x4b4   :  { %v969_v24 = vsel %vm967_vm5, %v966_v23, %v954_v5  ;;  %v1341_v5 = vld [vmem:[%s2007_s8] ss:$0 sm:$0xff]  ;;  %v1149_v23 = vld [vmem:[%s2010_s11 + $0x30] sm:$0xff]  ;;  %s1232_s8 = sshll.u32 %s1440_s9, 4  ;;  %s1233_s8 = int_to_ptr.vmem [resolvable:$true] %s1232_s8 }
 0x4b5   :  { %1287 = vmatmul.msk.f32.gmra.mxu0 %vm49_vm0, %v969_v24 }
 0x528   :  { %v999_v44 = vpop.f32.mrf.mxu0 }
 0x529   :  { %v1005_v28 = vadd.f32 %v1401_v27, %v999_v44  ;;  %v1148_v44 = vld [vmem:[%s2010_s11 + $0x28] sm:$0xff] }
 0x52b   :  { %v1838_v29 = vadd.f32 %v1339_v26, %v1005_v28 }
 0x52d   :  { %v1015_v30 = vsel %vm49_vm0, %v1838_v29, 0.0 }
 0x52e   :  { %1016 = vadd.xlane.f32.xlu0 %v1015_v30  ;;  %v1147_v30 = vld [vmem:[%s2010_s11 + $0x20] sm:$0xff] }
 0x532   :  { %v1002_v31 = vpop.f32.mrf.mxu0 }
 0x533   :  { %v1006_v33 = vadd.f32 %v1402_v32, %v1002_v31  ;;  %v1146_v32 = vld [vmem:[%s2010_s11 + $0x18] sm:$0xff] }
 0x535   :  { %v1845_v34 = vadd.f32 %v1339_v26, %v1006_v33 }
 0x537   :  { %v1018_v36 = vsel %vm49_vm0, %v1845_v34, 0.0 }
 0x538   :  { %1019 = vadd.xlane.f32.xlu1 %v1018_v36 }
 0x5a1   :  { %v1017_v22 = vpop.xlane.xlu0 %1016 }
 0x5a2   :  { %v1021_v37 = vmul.f32 %v1017_v22, %v1520_v10 }
 0x5a4   :  { %v1851_v35 = vsub.f32 %v1838_v29, %v1021_v37 }
 0x5a6   :  { %v1025_v38 = vmul.f32 %v1851_v35, %v1851_v35 }
 0x5a8   :  { %v1027_v6 = vsel %vm49_vm0, %v1025_v38, 0.0  ;;  %v1145_v38 = vld [vmem:[%s2010_s11 + $0x10] sm:$0xff] }
 0x5a9   :  { %1028 = vadd.xlane.f32.xlu2 %v1027_v6  ;;  %v1164_v6 = vld [vmem:[%s2010_s11 + $0xa8] sm:$0xff] }
 0x5aa   :  { %1211 = vmatpush.msra.mxu0 %v1164_v6 }
 0x5ab   :  { %v1020_v25 = vpop.xlane.xlu1 %1019 }
 0x5ac   :  { %v1022_v39 = vmul.f32 %v1020_v25, %v1520_v10  ;;  %v1144_v25 = vld [vmem:[%s2010_s11 + $0x8] sm:$0xff] }
 0x5ae   :  { %v1858_v40 = vsub.f32 %v1845_v34, %v1022_v39  ;;  %v1163_v39 = vld [vmem:[%s2010_s11 + $0xa0] sm:$0xff] }
 0x5af   :  { %1212 = vmatpush.msra.mxu0 %v1163_v39 }
 0x5b0   :  { %v1026_v41 = vmul.f32 %v1858_v40, %v1858_v40 }
 0x5b2   :  { %v1030_v42 = vsel %vm49_vm0, %v1026_v41, 0.0  ;;  %v1162_v41 = vld [vmem:[%s2010_s11 + $0x98] sm:$0xff] }
 0x5b3   :  { %1031 = vadd.xlane.f32.xlu0 %v1030_v42  ;;  %1213 = vmatpush.msra.mxu0 %v1162_v41  ;;  %v1161_v42 = vld [vmem:[%s2010_s11 + $0x90] sm:$0xff] }
 0x5b5   :  { %1214 = vmatpush.msra.mxu0 %v1161_v42 }
 0x5b7   :  { %1215 = vmatpush.msra.mxu0 %v1160_v43 }
 0x5b9   :  { %1216 = vmatpush.msra.mxu0 %v1159_v45 }
 0x61c   :  { %v1029_v56 = vpop.xlane.xlu2 %1028 }
 0x61d   :  { %v1033_v57 = vmul.f32 %v1029_v56, %v1520_v10 }
 0x61f   :  { %v1035_v58 = vadd.f32 1e-05, %v1033_v57 }
 0x621   :  { %1397 = vrsqrt.f32 %v1035_v58  ;;  %vm1043_vm9 = vweird.f32 %v1035_v58 }
 0x626   :  { %v1032_v62 = vpop.xlane.xlu0 %1031 }
 0x627   :  { %v1398_v63 = vpop.eup %1397  ;;  %v1034_v0 = vmul.f32 %v1032_v62, %v1520_v10  ;;  %v1154_v10 = vld [vmem:[%s2010_s11 + $0x58] sm:$0xff] }
 0x628   :  { %v1038_v7 = vmul.f32 %v1398_v63, %v1035_v58  ;;  %1182 = vmatpush.msrb.mxu3 %v1154_v10  ;;  %vm1044_vm8 = vweird.f32 %v1398_v63 }
 0x629   :  { %v1036_v9 = vadd.f32 1e-05, %v1034_v0  ;;  %vm1045_vm7 = vmor %vm1043_vm9, %vm1044_vm8 }
 0x62a   :  { %v1039_v11 = vmul.f32 %v1398_v63, %v1038_v7  ;;  %1183 = vmatpush.msrb.mxu3 %v1153_v8 }
 0x62b   :  { %1399 = vrsqrt.f32 %v1036_v9  ;;  %vm1053_vm11 = vweird.f32 %v1036_v9 }
 0x62c   :  { %v1040_v12 = vmul.f32 0.5, %v1039_v11  ;;  %1184 = vmatpush.msrb.mxu3 %v1152_v13 }
 0x62e   :  { %v1041_v14 = vsub.f32 1.5, %v1040_v12  ;;  %1185 = vmatpush.msrb.mxu3 %v1151_v15 }
 0x630   :  { %v1042_v16 = vmul.f32 %v1398_v63, %v1041_v14  ;;  %1186 = vmatpush.msrb.mxu3 %v1150_v20 }
 0x631   :  { %v1400_v18 = vpop.eup %1399 }
 0x632   :  { %v1046_v21 = vsel %vm1045_vm7, %v1398_v63, %v1042_v16  ;;  %v1048_v2 = vmul.f32 %v1400_v18, %v1036_v9  ;;  %1187 = vmatpush.msrb.mxu3 %v1149_v23  ;;  %vm1054_vm10 = vweird.f32 %v1400_v18 }
 0x633   :  { %v1057_v17 = vmul.f32 %v1046_v21, %v1851_v35  ;;  %vm1055_vm12 = vmor %vm1053_vm11, %vm1054_vm10 }
 0x634   :  { %v1049_v24 = vmul.f32 %v1400_v18, %v1048_v2  ;;  %1188 = vmatpush.msrb.mxu3 %v1148_v44 }
 0x635   :  { %v1062_v26 = vmul.f32 %v1340_v19, %v1057_v17 }
 0x636   :  { %v1050_v27 = vmul.f32 0.5, %v1049_v24  ;;  %1189 = vmatpush.msrb.mxu3 %v1147_v30 }
 0x637   :  { %v1067_v28 = vadd.f32 %v1341_v5, %v1062_v26 }
 0x638   :  { %v1051_v31 = vsub.f32 1.5, %v1050_v27  ;;  %1190 = vmatpush.msrb.mxu3 %v1146_v32 }
 0x639   :  { %1288 = vmatmul.msk.f32.vlgmr.msra.gmra.mxu1 %vm49_vm0, %v1067_v28  ;;  %1290 = vmatmul.msk.f32.vlgmr.msra.gmra.mxu2 %vm49_vm0, %v1067_v28 }
 0x63a   :  { %v1052_v33 = vmul.f32 %v1400_v18, %v1051_v31  ;;  %1191 = vmatpush.msrb.mxu3 %v1145_v38 }
 0x63c   :  { %v1056_v36 = vsel %vm1055_vm12, %v1400_v18, %v1052_v33  ;;  %1192 = vmatpush.msrb.mxu3 %v1144_v25 }
 0x63d   :  { %v1058_v22 = vmul.f32 %v1056_v36, %v1858_v40  ;;  %v1143_v40 = vld [vmem:[%s2010_s11] sm:$0xff] }
 0x63e   :  { %1193 = vmatpush.msrb.mxu3 %v1143_v40 }
 0x63f   :  { %v1063_v37 = vmul.f32 %v1340_v19, %v1058_v22 }
 0x641   :  { %v1068_v35 = vadd.f32 %v1341_v5, %v1063_v37 }
 0x643   :  { %1289 = vmatmul.msk.f32.gmra.mxu1 %vm49_vm0, %v1068_v35  ;;  %1291 = vmatmul.msk.f32.gmra.mxu2 %vm49_vm0, %v1068_v35 }
 0x6b6   :  { %v1110_v49 = vpop.f32.mrf.mxu1 }
 0x6b7   :  { %v1111_v50 = vadd.f32 %v1110_v49, %v1083_v48 }
 0x6b9   :  { %v1139_v51 = vmax.f32 %v1111_v50, 0.0 }
 0x6bb   :  { %1194 = vmatmul.f32.vlgmr.msrb.gmra.mxu3 %v1139_v51 }
 0x6bc   :  { %v1133_v47 = vpop.f32.mrf.mxu2 }
 0x6bd   :  { %v1134_v53 = vadd.f32 %v1133_v47, %v1084_v52 }
 0x6bf   :  { %v1140_v54 = vmax.f32 %v1134_v53, 0.0 }
 0x6c0   :  { %v1113_v55 = vpop.f32.mrf.mxu1 }
 0x6c1   :  { %v1114_v56 = vadd.f32 %v1113_v55, %v1083_v48  ;;  %1292 = vmatmul.msk.f32.vlgmr.msra.gmra.mxu0 %vm1171_vm13, %v1140_v54 }
 0x6c3   :  { %v1141_v57 = vmax.f32 %v1114_v56, 0.0 }
 0x6c5   :  { %1197 = vmatmul.f32.gmra.mxu3 %v1141_v57 }
 0x6c6   :  { %v1136_v58 = vpop.f32.mrf.mxu2 }
 0x6c7   :  { %v1137_v59 = vadd.f32 %v1136_v58, %v1084_v52 }
 0x6c9   :  { %v1142_v60 = vmax.f32 %v1137_v59, 0.0 }
 0x6cb   :  { %1293 = vmatmul.msk.f32.gmra.mxu0 %vm1171_vm13, %v1142_v60 }
 0x73e   :  { %v1195_v62 = vpop.f32.mrf.mxu3  ;;  %v1218_v0 = vpop.f32.mrf.mxu0 }
 0x73f   :  { %v1196_v63 = vadd.f32 %v1342_v61, %v1195_v62 }
 0x741   :  { %v1219_v1 = vadd.f32 %v1218_v0, %v1196_v63 }
 0x743   :  { %v1224_v3 = vadd.f32 %v1219_v1, %v1838_v29 }
 0x745   :  { %1226 = vst.msk [vmem:[#allocation2] sm:$0xff] %vm49_vm0, %v1224_v3 }
 0x748   :  { %v1198_v4 = vpop.f32.mrf.mxu3  ;;  %v1221_v9 = vpop.f32.mrf.mxu0 }
 0x749   :  { %v1199_v7 = vadd.f32 %v1342_v61, %v1198_v4 }
 0x74b   :  { %v1222_v10 = vadd.f32 %v1221_v9, %v1199_v7 }
 0x74d   :  { %v1225_v11 = vadd.f32 %v1222_v10, %v1845_v34 }
 0x74f   :  { %1227 = vst.msk [vmem:[#allocation2 + $0x8] sm:$0xff] %vm49_vm0, %v1225_v11 }
 0x750   :  { %1240 = dma.vmem_to_hbm [thread:$0]  %s1233_s8, 256, %s1235_s17, [#allocation3], %s1441_s12, %s1441_s12, %s1434_s24  }
 0x751   :  { %1427 = dma.done.wait [#allocation3], 256  }
 0x752   :  { %1428 = vsyncadd [#allocation3], 4294967040 }
 0x753   :  { %1245 = vsyncpa [#allocation3], 1 }

</bundles_post_ra>
